<compile_context>
chip_gen: v5e
topology: v5e:2x2
jax: 0.10.0
libtpu: 0.0.40
codegen_flags: <defaults>
</compile_context>

<pallas_src>
import jax
import jax.numpy as jnp
from jax.experimental import pallas as pl
from jax.experimental.pallas import tpu as pltpu

WIN_RAD = 1
WIN_DIAM = 2 * WIN_RAD + 1            # 3
WIN_SIZE = WIN_DIAM * WIN_DIAM        # 9
EPS = 1e-7

LANE = 128
_BR_MAX = 512                         # hard cap on anchor rows per grid step
_LIVE_PLANES = 160                    # conservative live (rows, wp) f32 plane count
                                      # (DMA slabs + compiler temporaries)


def _cdiv(a, b):
    return -(-a // b)


def _round_up(x, m):
    return ((x + m - 1) // m) * m


def _vmem_capacity_bytes():
    try:
        return int(pltpu.get_tpu_info().vmem_capacity_bytes)
    except Exception:
        return 64 * 1024 * 1024       # conservative fallback (v7x per-core VMEM)


_VMEM_LIMIT = int(min(_vmem_capacity_bytes() * 3 // 4, 96 * 1024 * 1024))
_BUDGET_ELEMS = max(8 * LANE, _VMEM_LIMIT // (4 * _LIVE_PLANES))


def _make_matting_kernel(br, wp, nslab, rb_per_chunk, hr, wr):
    """br: anchor rows per step; wp: padded width; nslab = br + 8 slab rows;
    hr/wr: number of valid window anchors per axis."""
    inv_ws = 1.0 / WIN_SIZE
    reg = EPS * inv_ws

    def kernel(tgt_hbm, sty_hbm, out_ref, tbuf, sbuf, sem, acc_ref, cmask_ref):
        # tgt_hbm/sty_hbm: (3, hp, wp) raw images in HBM (pl.ANY).
        # tbuf/sbuf: (2, 3, nslab, wp) double-buffered row slabs in VMEM.
        # sem: DMA semaphores [image, channel, slot].
        # acc_ref: (br, wp) loss accumulator; cmask_ref: (br, wp) column mask.
        p = pl.program_id(0)
        i = pl.program_id(1)
        slot = i % 2

        def start_fetch(step, buf_slot):
            row0 = pl.multiple_of((p * rb_per_chunk + step) * br, 8)
            for img, (hbm, buf) in enumerate(((tgt_hbm, tbuf), (sty_hbm, sbuf))):
                for c in range(3):
                    pltpu.make_async_copy(
                        hbm.at[c, pl.ds(row0, nslab)],
                        buf.at[buf_slot, c],
                        sem.at[img, c, buf_slot],
                    ).start()

        def wait_fetch(buf_slot):
            for img, (hbm, buf) in enumerate(((tgt_hbm, tbuf), (sty_hbm, sbuf))):
                for c in range(3):
                    pltpu.make_async_copy(
                        hbm.at[c, pl.ds(0, nslab)],
                        buf.at[buf_slot, c],
                        sem.at[img, c, buf_slot],
                    ).wait()

        @pl.when(i == 0)
        def _init():
            acc_ref[...] = jnp.zeros_like(acc_ref)
            cols = jax.lax.broadcasted_iota(jnp.int32, (br, wp), 1)
            cmask_ref[...] = (cols < wr).astype(jnp.float32)
            start_fetch(0, 0)

        wait_fetch(slot)

        if rb_per_chunk > 1:
            @pl.when(i + 1 < rb_per_chunk)
            def _prefetch():
                start_fetch(i + 1, 1 - slot)

        def box3(x):
            # out[r, c] = sum_{dy, dx in 0..2} x[r + dy, c + dx].
            # Sublane (row) 3-tap first, then lane (col) 3-tap.  Wrapped lanes
            # land only in masked columns (>= wr); wrapped rows are never read.
            v = (x
                 + pltpu.roll(x, nslab - 1, axis=0)
                 + pltpu.roll(x, nslab - 2, axis=0))
            v = v[0:br, :]
            return (v
                    + pltpu.roll(v, wp - 1, axis=1)
                    + pltpu.roll(v, wp - 2, axis=1))

        t = [tbuf[slot, c] for c in range(3)]          # (nslab, wp) each
        s = [sbuf[slot, c] for c in range(3)]

        # ---- target window statistics (box-filter form) -------------------
        mu = [box3(t[a]) * inv_ws for a in range(3)]
        m = [[None] * 3 for _ in range(3)]
        for a in range(3):
            for b in range(a, 3):
                cab = box3(t[a] * t[b]) * inv_ws - mu[a] * mu[b]
                if a == b:
                    cab = cab + reg
                m[a][b] = cab
                m[b][a] = cab

        # Symmetric 3x3 cofactor inverse; factor 2 folded into off-diagonals.
        c00 = m[1][1] * m[2][2] - m[1][2] * m[1][2]
        c01 = m[0][2] * m[1][2] - m[0][1] * m[2][2]
        c02 = m[0][1] * m[1][2] - m[0][2] * m[1][1]
        c11 = m[0][0] * m[2][2] - m[0][2] * m[0][2]
        c12 = m[0][2] * m[0][1] - m[0][0] * m[1][2]
        c22 = m[0][0] * m[1][1] - m[0][1] * m[0][1]
        det = m[0][0] * c00 + m[0][1] * c01 + m[0][2] * c02
        rdet = pl.reciprocal(det, approx=True)          # EUP slot
        w00 = c00 * rdet
        w11 = c11 * rdet
        w22 = c22 * rdet
        w01 = (c01 + c01) * rdet
        w02 = (c02 + c02) * rdet
        w12 = (c12 + c12) * rdet

        # ---- style terms ---------------------------------------------------
        bs = [box3(s[c]) for c in range(3)]
        term1 = box3(s[0] * s[0] + s[1] * s[1] + s[2] * s[2])
        term2 = bs[0] * bs[0] + bs[1] * bs[1] + bs[2] * bs[2]

        term3 = None
        for c in range(3):
            a0 = box3(t[0] * s[c]) - mu[0] * bs[c]
            a1 = box3(t[1] * s[c]) - mu[1] * bs[c]
            a2 = box3(t[2] * s[c]) - mu[2] * bs[c]
            t3 = (w00 * a0 * a0 + w11 * a1 * a1 + w22 * a2 * a2
                  + w01 * (a0 * a1) + w02 * (a0 * a2) + w12 * (a1 * a2))
            term3 = t3 if term3 is None else term3 + t3

        per_win = term1 - inv_ws * (term2 + term3)      # (br, wp)
        contrib = per_win * cmask_ref[...]              # hoisted column mask

        row0 = (p * rb_per_chunk + i) * br
        interior = row0 + br <= hr

        @pl.when(interior)
        def _acc_interior():
            acc_ref[...] = acc_ref[...] + contrib

        @pl.when(jnp.logical_not(interior))
        def _acc_boundary():
            rows = jax.lax.broadcasted_iota(jnp.int32, (br, wp), 0) + row0
            acc_ref[...] = acc_ref[...] + jnp.where(rows < hr, contrib, 0.0)

        @pl.when(i == rb_per_chunk - 1)
        def _finalize():
            total = jnp.sum(acc_ref[...])
            out_ref[...] = jnp.full(out_ref.shape, total, out_ref.dtype)

    return kernel


@jax.jit
def matting_laplacian_loss(target, style_map):
    """trace(V @ L(target) @ V.T) with V = style_map.reshape(3, -1)."""
    assert target.shape == style_map.shape and target.shape[0] == 3
    _, h, w = target.shape
    assert h >= WIN_DIAM and w >= WIN_DIAM
    hr, wr = h - WIN_DIAM + 1, w - WIN_DIAM + 1        # valid window anchors

    wp = _round_up(w, LANE)
    br_cap = max(8, min(_BR_MAX, (_BUDGET_ELEMS // wp) // 8 * 8))
    n_chunks = 2 if hr > 8 else 1                      # feeds v7x's 2 TensorCores
    rb_per_chunk = max(1, _cdiv(_cdiv(hr, n_chunks), br_cap))
    br = min(br_cap, max(8, _round_up(_cdiv(hr, n_chunks * rb_per_chunk), 8)))
    n_row_blocks = n_chunks * rb_per_chunk
    nslab = br + 8                                     # block rows + aligned halo
    hp = n_row_blocks * br + 8                         # minimal row padding

    # Per-channel global centering of the guide image: the matting Laplacian
    # is exactly invariant to it and it conditions the E[xy]-mu*mu covariance.
    tgt = target.astype(jnp.float32)
    tgt = tgt - jnp.mean(tgt, axis=(1, 2), keepdims=True)
    sty = style_map.astype(jnp.float32)
    tgt = jnp.pad(tgt, ((0, 0), (0, hp - h), (0, wp - w)))
    sty = jnp.pad(sty, ((0, 0), (0, hp - h), (0, wp - w)))

    kernel = _make_matting_kernel(br, wp, nslab, rb_per_chunk, hr, wr)
    partials = pl.pallas_call(
        kernel,
        out_shape=jax.ShapeDtypeStruct((n_chunks, 8, LANE), jnp.float32),
        grid_spec=pltpu.PrefetchScalarGridSpec(
            num_scalar_prefetch=0,
            grid=(n_chunks, rb_per_chunk),
            in_specs=[pl.BlockSpec(memory_space=pl.ANY),     # target (3, hp, wp) HBM
                      pl.BlockSpec(memory_space=pl.ANY)],    # style  (3, hp, wp) HBM
            out_specs=pl.BlockSpec((1, 8, LANE), lambda p, i: (p, 0, 0)),
            scratch_shapes=[
                pltpu.VMEM((2, 3, nslab, wp), jnp.float32),  # target slabs (dbl buf)
                pltpu.VMEM((2, 3, nslab, wp), jnp.float32),  # style  slabs (dbl buf)
                pltpu.SemaphoreType.DMA((2, 3, 2)),          # [image, channel, slot]
                pltpu.VMEM((br, wp), jnp.float32),           # loss accumulator
                pltpu.VMEM((br, wp), jnp.float32),           # column validity mask
            ],
        ),
        compiler_params=pltpu.CompilerParams(
            dimension_semantics=("parallel", "arbitrary"),
            vmem_limit_bytes=_VMEM_LIMIT,
        ),
    )(tgt, sty)
    return jnp.sum(partials[:, 0, 0])


def reference_loss(target, style_map, eps=EPS):
    # Pure-JAX transcription of the PyTorch module (dense L), for validation.
    d, h, w = target.shape
    hw = h * w
    indsM = jnp.arange(hw).reshape(h, w)
    ravel_img = target.reshape(d, hw).T                        # (hw, 3)
    hh, ww = h - WIN_DIAM + 1, w - WIN_DIAM + 1
    win_inds = jnp.stack([indsM[dy:dy + hh, dx:dx + ww].reshape(-1)
                          for dy in range(WIN_DIAM) for dx in range(WIN_DIAM)],
                         axis=-1)                              # (N, 9)
    winI = ravel_img[win_inds]                                 # (N, 9, 3)
    win_mu = jnp.mean(winI, axis=1, keepdims=True)
    win_var = (jnp.einsum('nji,njk->nik', winI, winI) / WIN_SIZE
               - jnp.einsum('nji,njk->nik', win_mu, win_mu))
    inv = jnp.linalg.inv(win_var + eps / WIN_SIZE * jnp.eye(3))
    X = jnp.einsum('nij,njk->nik', winI - win_mu, inv)
    vals = jnp.eye(WIN_SIZE) - (1.0 / WIN_SIZE) * (
        1.0 + jnp.einsum('nij,nkj->nik', X, winI - win_mu))
    rows = jnp.repeat(win_inds.reshape(-1), WIN_SIZE)
    cols = jnp.tile(win_inds, (1, WIN_SIZE)).reshape(-1)
    L = jnp.zeros((hw, hw), jnp.float32).at[rows, cols].add(vals.reshape(-1))
    V = style_map.reshape(3, -1)
    return jnp.trace(V @ (L @ V.T))


if __name__ == "__main__":
    key = jax.random.PRNGKey(0)
    k1, k2, k3, k4 = jax.random.split(key, 4)

    # Square case.
    H = W = 16
    target = jax.random.uniform(k1, (3, H, W), dtype=jnp.float32)
    style_map = jax.random.uniform(k2, (3, H, W), dtype=jnp.float32)
    out = jax.block_until_ready(matting_laplacian_loss(target, style_map))
    ref = reference_loss(target, style_map)
    rel = abs(float(out) - float(ref)) / max(abs(float(ref)), 1e-6)
    assert rel < 1e-2, f"mismatch 16x16: kernel={float(out)} ref={float(ref)} rel={rel}"

    # Rectangular case (exercises row/column masking and the 2-chunk path).
    H2, W2 = 21, 45
    target2 = jax.random.uniform(k3, (3, H2, W2), dtype=jnp.float32)
    style_map2 = jax.random.uniform(k4, (3, H2, W2), dtype=jnp.float32)
    out2 = jax.block_until_ready(matting_laplacian_loss(target2, style_map2))
    ref2 = reference_loss(target2, style_map2)
    rel2 = abs(float(out2) - float(ref2)) / max(abs(float(ref2)), 1e-6)
    assert rel2 < 1e-2, f"mismatch 21x45: kernel={float(out2)} ref={float(ref2)} rel={rel2}"

    print("KERNEL_OK")
</pallas_src>

<mosaic_0001>
module attributes {stable_mosaic.version = 11 : i64} {
  func.func @kernel(%arg0: i32, %arg1: i32, %arg2: memref<3x24x128xf32, #tpu.memory_space<any>>, %arg3: memref<3x24x128xf32, #tpu.memory_space<any>>, %arg4: memref<1x8x128xf32, #tpu.memory_space<vmem>>, %arg5: memref<2x3x16x128xf32, #tpu.memory_space<vmem>>, %arg6: memref<2x3x16x128xf32, #tpu.memory_space<vmem>>, %arg7: memref<2x3x2x!tpu.dma_semaphore, #tpu.memory_space<semaphore_mem>>, %arg8: memref<8x128xf32, #tpu.memory_space<vmem>>, %arg9: memref<8x128xf32, #tpu.memory_space<vmem>>) attributes {dimension_semantics = [#tpu.dimension_semantics<parallel>, #tpu.dimension_semantics<arbitrary>], iteration_bounds = array<i64: 2, 1>, scalar_prefetch = 0 : i64, scratch_operands = 5 : i64, tpu.core_type = #tpu.core_type<tc>, window_params = [{}, {}, {transform_indices = @transform_2, window_bounds = array<i64: 1, 8, 128>}]} {
    %c2_i32 = arith.constant 2 : i32
    %c0_i32 = arith.constant 0 : i32
    %0 = arith.cmpi eq, %c2_i32, %c0_i32 : i32
    %c1_i32 = arith.constant 1 : i32
    %1 = arith.select %0, %c1_i32, %c2_i32 : i32
    %2 = arith.remsi %arg1, %1 : i32
    %c0_i32_0 = arith.constant 0 : i32
    %3 = arith.cmpi ne, %2, %c0_i32_0 : i32
    %c0_i32_1 = arith.constant 0 : i32
    %4 = arith.cmpi slt, %2, %c0_i32_1 : i32
    %c0_i32_2 = arith.constant 0 : i32
    %5 = arith.cmpi slt, %1, %c0_i32_2 : i32
    %6 = arith.xori %4, %5 : i1
    %7 = arith.andi %6, %3 : i1
    %8 = arith.addi %2, %1 : i32
    %9 = arith.select %7, %8, %2 : i32
    %c0_i32_3 = arith.constant 0 : i32
    %10 = arith.cmpi eq, %arg1, %c0_i32_3 : i32
    %11 = arith.extui %10 : i1 to i32
    %c0_i32_4 = arith.constant 0 : i32
    %12 = arith.cmpi ne, %11, %c0_i32_4 : i32
    scf.if %12 {
      %cst_173 = arith.constant 0.000000e+00 : f32
      %449 = vector.broadcast %cst_173 : f32 to vector<8x128xf32>
      %c0_174 = arith.constant 0 : index
      %c0_175 = arith.constant 0 : index
      %450 = vector.load %arg8[%c0_174, %c0_175] : memref<8x128xf32, #tpu.memory_space<vmem>>, vector<8x128xf32>
      tpu.vector_store %arg8[%c0_174, %c0_175], %449 {strides = array<i32>} : memref<8x128xf32, #tpu.memory_space<vmem>>, vector<8x128xf32>,
      %451 = tpu.iota {dimensions = array<i32: 1>} : vector<8x128xi32>
      %c14_i32_176 = arith.constant 14 : i32
      %452 = vector.broadcast %c14_i32_176 : i32 to vector<8x128xi32>
      %453 = arith.cmpi slt, %451, %452 : vector<8x128xi32>
      %454 = arith.extui %453 : vector<8x128xi1> to vector<8x128xi32>
      %455 = arith.sitofp %454 : vector<8x128xi32> to vector<8x128xf32>
      %c0_177 = arith.constant 0 : index
      %c0_178 = arith.constant 0 : index
      %456 = vector.load %arg9[%c0_177, %c0_178] : memref<8x128xf32, #tpu.memory_space<vmem>>, vector<8x128xf32>
      tpu.vector_store %arg9[%c0_177, %c0_178], %455 {strides = array<i32>} : memref<8x128xf32, #tpu.memory_space<vmem>>, vector<8x128xf32>,
      %c1_i32_179 = arith.constant 1 : i32
      %457 = arith.muli %arg0, %c1_i32_179 : i32
      %c0_i32_180 = arith.constant 0 : i32
      %458 = arith.addi %457, %c0_i32_180 : i32
      %c8_i32_181 = arith.constant 8 : i32
      %459 = arith.muli %458, %c8_i32_181 : i32
      %460 = tpu.assume_multiple %459, 8 : i32
      %c0_i32_182 = arith.constant 0 : i32
      %c0_i32_183 = arith.constant 0 : i32
      %c0_i32_184 = arith.constant 0 : i32
      %c0_i32_185 = arith.constant 0 : i32
      %c0_i32_186 = arith.constant 0 : i32
      %c0_i32_187 = arith.constant 0 : i32
      %c0_i32_188 = arith.constant 0 : i32
      %461 = tpu.memref_slice %arg2[%c0_i32_182, %460, %c0_i32_188] : memref<3x24x128xf32, #tpu.memory_space<any>> -> memref<1x16x128xf32, #tpu.memory_space<any>>
      %462 = tpu.memref_squeeze %461 : memref<1x16x128xf32, #tpu.memory_space<any>> -> memref<16x128xf32, #tpu.memory_space<any>>
      %c0_i32_189 = arith.constant 0 : i32
      %c0_i32_190 = arith.constant 0 : i32
      %463 = tpu.memref_slice %arg5[%c0_i32_183, %c0_i32_184, %c0_i32_189, %c0_i32_190] : memref<2x3x16x128xf32, #tpu.memory_space<vmem>> -> memref<1x1x16x128xf32, #tpu.memory_space<vmem>>
      %464 = tpu.memref_squeeze %463 : memref<1x1x16x128xf32, #tpu.memory_space<vmem>> -> memref<16x128xf32, #tpu.memory_space<vmem>>
      %465 = tpu.memref_slice %arg7[%c0_i32_185, %c0_i32_186, %c0_i32_187] : memref<2x3x2x!tpu.dma_semaphore, #tpu.memory_space<semaphore_mem>> -> memref<1x1x1x!tpu.dma_semaphore, #tpu.memory_space<semaphore_mem>>
      %466 = tpu.memref_squeeze %465 : memref<1x1x1x!tpu.dma_semaphore, #tpu.memory_space<semaphore_mem>> -> memref<!tpu.dma_semaphore, #tpu.memory_space<semaphore_mem>>
      tpu.enqueue_dma source(%462 : memref<16x128xf32, #tpu.memory_space<any>>) target(%464 : memref<16x128xf32, #tpu.memory_space<vmem>>) target_semaphore(%466 : memref<!tpu.dma_semaphore, #tpu.memory_space<semaphore_mem>>)
      %c1_i32_191 = arith.constant 1 : i32
      %c0_i32_192 = arith.constant 0 : i32
      %c1_i32_193 = arith.constant 1 : i32
      %c0_i32_194 = arith.constant 0 : i32
      %c1_i32_195 = arith.constant 1 : i32
      %c0_i32_196 = arith.constant 0 : i32
      %c0_i32_197 = arith.constant 0 : i32
      %467 = tpu.memref_slice %arg2[%c1_i32_191, %460, %c0_i32_197] : memref<3x24x128xf32, #tpu.memory_space<any>> -> memref<1x16x128xf32, #tpu.memory_space<any>>
      %468 = tpu.memref_squeeze %467 : memref<1x16x128xf32, #tpu.memory_space<any>> -> memref<16x128xf32, #tpu.memory_space<any>>
      %c0_i32_198 = arith.constant 0 : i32
      %c0_i32_199 = arith.constant 0 : i32
      %469 = tpu.memref_slice %arg5[%c0_i32_192, %c1_i32_193, %c0_i32_198, %c0_i32_199] : memref<2x3x16x128xf32, #tpu.memory_space<vmem>> -> memref<1x1x16x128xf32, #tpu.memory_space<vmem>>
      %470 = tpu.memref_squeeze %469 : memref<1x1x16x128xf32, #tpu.memory_space<vmem>> -> memref<16x128xf32, #tpu.memory_space<vmem>>
      %471 = tpu.memref_slice %arg7[%c0_i32_194, %c1_i32_195, %c0_i32_196] : memref<2x3x2x!tpu.dma_semaphore, #tpu.memory_space<semaphore_mem>> -> memref<1x1x1x!tpu.dma_semaphore, #tpu.memory_space<semaphore_mem>>
      %472 = tpu.memref_squeeze %471 : memref<1x1x1x!tpu.dma_semaphore, #tpu.memory_space<semaphore_mem>> -> memref<!tpu.dma_semaphore, #tpu.memory_space<semaphore_mem>>
      tpu.enqueue_dma source(%468 : memref<16x128xf32, #tpu.memory_space<any>>) target(%470 : memref<16x128xf32, #tpu.memory_space<vmem>>) target_semaphore(%472 : memref<!tpu.dma_semaphore, #tpu.memory_space<semaphore_mem>>)
      %c2_i32_200 = arith.constant 2 : i32
      %c0_i32_201 = arith.constant 0 : i32
      %c2_i32_202 = arith.constant 2 : i32
      %c0_i32_203 = arith.constant 0 : i32
      %c2_i32_204 = arith.constant 2 : i32
      %c0_i32_205 = arith.constant 0 : i32
      %c0_i32_206 = arith.constant 0 : i32
      %473 = tpu.memref_slice %arg2[%c2_i32_200, %460, %c0_i32_206] : memref<3x24x128xf32, #tpu.memory_space<any>> -> memref<1x16x128xf32, #tpu.memory_space<any>>
      %474 = tpu.memref_squeeze %473 : memref<1x16x128xf32, #tpu.memory_space<any>> -> memref<16x128xf32, #tpu.memory_space<any>>
      %c0_i32_207 = arith.constant 0 : i32
      %c0_i32_208 = arith.constant 0 : i32
      %475 = tpu.memref_slice %arg5[%c0_i32_201, %c2_i32_202, %c0_i32_207, %c0_i32_208] : memref<2x3x16x128xf32, #tpu.memory_space<vmem>> -> memref<1x1x16x128xf32, #tpu.memory_space<vmem>>
      %476 = tpu.memref_squeeze %475 : memref<1x1x16x128xf32, #tpu.memory_space<vmem>> -> memref<16x128xf32, #tpu.memory_space<vmem>>
      %477 = tpu.memref_slice %arg7[%c0_i32_203, %c2_i32_204, %c0_i32_205] : memref<2x3x2x!tpu.dma_semaphore, #tpu.memory_space<semaphore_mem>> -> memref<1x1x1x!tpu.dma_semaphore, #tpu.memory_space<semaphore_mem>>
      %478 = tpu.memref_squeeze %477 : memref<1x1x1x!tpu.dma_semaphore, #tpu.memory_space<semaphore_mem>> -> memref<!tpu.dma_semaphore, #tpu.memory_space<semaphore_mem>>
      tpu.enqueue_dma source(%474 : memref<16x128xf32, #tpu.memory_space<any>>) target(%476 : memref<16x128xf32, #tpu.memory_space<vmem>>) target_semaphore(%478 : memref<!tpu.dma_semaphore, #tpu.memory_space<semaphore_mem>>)
      %c0_i32_209 = arith.constant 0 : i32
      %c0_i32_210 = arith.constant 0 : i32
      %c0_i32_211 = arith.constant 0 : i32
      %c1_i32_212 = arith.constant 1 : i32
      %c0_i32_213 = arith.constant 0 : i32
      %c0_i32_214 = arith.constant 0 : i32
      %c0_i32_215 = arith.constant 0 : i32
      %479 = tpu.memref_slice %arg3[%c0_i32_209, %460, %c0_i32_215] : memref<3x24x128xf32, #tpu.memory_space<any>> -> memref<1x16x128xf32, #tpu.memory_space<any>>
      %480 = tpu.memref_squeeze %479 : memref<1x16x128xf32, #tpu.memory_space<any>> -> memref<16x128xf32, #tpu.memory_space<any>>
      %c0_i32_216 = arith.constant 0 : i32
      %c0_i32_217 = arith.constant 0 : i32
      %481 = tpu.memref_slice %arg6[%c0_i32_210, %c0_i32_211, %c0_i32_216, %c0_i32_217] : memref<2x3x16x128xf32, #tpu.memory_space<vmem>> -> memref<1x1x16x128xf32, #tpu.memory_space<vmem>>
      %482 = tpu.memref_squeeze %481 : memref<1x1x16x128xf32, #tpu.memory_space<vmem>> -> memref<16x128xf32, #tpu.memory_space<vmem>>
      %483 = tpu.memref_slice %arg7[%c1_i32_212, %c0_i32_213, %c0_i32_214] : memref<2x3x2x!tpu.dma_semaphore, #tpu.memory_space<semaphore_mem>> -> memref<1x1x1x!tpu.dma_semaphore, #tpu.memory_space<semaphore_mem>>
      %484 = tpu.memref_squeeze %483 : memref<1x1x1x!tpu.dma_semaphore, #tpu.memory_space<semaphore_mem>> -> memref<!tpu.dma_semaphore, #tpu.memory_space<semaphore_mem>>
      tpu.enqueue_dma source(%480 : memref<16x128xf32, #tpu.memory_space<any>>) target(%482 : memref<16x128xf32, #tpu.memory_space<vmem>>) target_semaphore(%484 : memref<!tpu.dma_semaphore, #tpu.memory_space<semaphore_mem>>)
      %c1_i32_218 = arith.constant 1 : i32
      %c0_i32_219 = arith.constant 0 : i32
      %c1_i32_220 = arith.constant 1 : i32
      %c1_i32_221 = arith.constant 1 : i32
      %c1_i32_222 = arith.constant 1 : i32
      %c0_i32_223 = arith.constant 0 : i32
      %c0_i32_224 = arith.constant 0 : i32
      %485 = tpu.memref_slice %arg3[%c1_i32_218, %460, %c0_i32_224] : memref<3x24x128xf32, #tpu.memory_space<any>> -> memref<1x16x128xf32, #tpu.memory_space<any>>
      %486 = tpu.memref_squeeze %485 : memref<1x16x128xf32, #tpu.memory_space<any>> -> memref<16x128xf32, #tpu.memory_space<any>>
      %c0_i32_225 = arith.constant 0 : i32
      %c0_i32_226 = arith.constant 0 : i32
      %487 = tpu.memref_slice %arg6[%c0_i32_219, %c1_i32_220, %c0_i32_225, %c0_i32_226] : memref<2x3x16x128xf32, #tpu.memory_space<vmem>> -> memref<1x1x16x128xf32, #tpu.memory_space<vmem>>
      %488 = tpu.memref_squeeze %487 : memref<1x1x16x128xf32, #tpu.memory_space<vmem>> -> memref<16x128xf32, #tpu.memory_space<vmem>>
      %489 = tpu.memref_slice %arg7[%c1_i32_221, %c1_i32_222, %c0_i32_223] : memref<2x3x2x!tpu.dma_semaphore, #tpu.memory_space<semaphore_mem>> -> memref<1x1x1x!tpu.dma_semaphore, #tpu.memory_space<semaphore_mem>>
      %490 = tpu.memref_squeeze %489 : memref<1x1x1x!tpu.dma_semaphore, #tpu.memory_space<semaphore_mem>> -> memref<!tpu.dma_semaphore, #tpu.memory_space<semaphore_mem>>
      tpu.enqueue_dma source(%486 : memref<16x128xf32, #tpu.memory_space<any>>) target(%488 : memref<16x128xf32, #tpu.memory_space<vmem>>) target_semaphore(%490 : memref<!tpu.dma_semaphore, #tpu.memory_space<semaphore_mem>>)
      %c2_i32_227 = arith.constant 2 : i32
      %c0_i32_228 = arith.constant 0 : i32
      %c2_i32_229 = arith.constant 2 : i32
      %c1_i32_230 = arith.constant 1 : i32
      %c2_i32_231 = arith.constant 2 : i32
      %c0_i32_232 = arith.constant 0 : i32
      %c0_i32_233 = arith.constant 0 : i32
      %491 = tpu.memref_slice %arg3[%c2_i32_227, %460, %c0_i32_233] : memref<3x24x128xf32, #tpu.memory_space<any>> -> memref<1x16x128xf32, #tpu.memory_space<any>>
      %492 = tpu.memref_squeeze %491 : memref<1x16x128xf32, #tpu.memory_space<any>> -> memref<16x128xf32, #tpu.memory_space<any>>
      %c0_i32_234 = arith.constant 0 : i32
      %c0_i32_235 = arith.constant 0 : i32
      %493 = tpu.memref_slice %arg6[%c0_i32_228, %c2_i32_229, %c0_i32_234, %c0_i32_235] : memref<2x3x16x128xf32, #tpu.memory_space<vmem>> -> memref<1x1x16x128xf32, #tpu.memory_space<vmem>>
      %494 = tpu.memref_squeeze %493 : memref<1x1x16x128xf32, #tpu.memory_space<vmem>> -> memref<16x128xf32, #tpu.memory_space<vmem>>
      %495 = tpu.memref_slice %arg7[%c1_i32_230, %c2_i32_231, %c0_i32_232] : memref<2x3x2x!tpu.dma_semaphore, #tpu.memory_space<semaphore_mem>> -> memref<1x1x1x!tpu.dma_semaphore, #tpu.memory_space<semaphore_mem>>
      %496 = tpu.memref_squeeze %495 : memref<1x1x1x!tpu.dma_semaphore, #tpu.memory_space<semaphore_mem>> -> memref<!tpu.dma_semaphore, #tpu.memory_space<semaphore_mem>>
      tpu.enqueue_dma source(%492 : memref<16x128xf32, #tpu.memory_space<any>>) target(%494 : memref<16x128xf32, #tpu.memory_space<vmem>>) target_semaphore(%496 : memref<!tpu.dma_semaphore, #tpu.memory_space<semaphore_mem>>)
    } else {
    }
    %c0_i32_5 = arith.constant 0 : i32
    %c0_i32_6 = arith.constant 0 : i32
    %c0_i32_7 = arith.constant 0 : i32
    %c0_i32_8 = arith.constant 0 : i32
    %c0_i32_9 = arith.constant 0 : i32
    %c0_i32_10 = arith.constant 0 : i32
    %13 = tpu.memref_slice %arg2[%c0_i32_5, %c0_i32_9, %c0_i32_10] : memref<3x24x128xf32, #tpu.memory_space<any>> -> memref<1x16x128xf32, #tpu.memory_space<any>>
    %14 = tpu.memref_squeeze %13 : memref<1x16x128xf32, #tpu.memory_space<any>> -> memref<16x128xf32, #tpu.memory_space<any>>
    %c0_i32_11 = arith.constant 0 : i32
    %c0_i32_12 = arith.constant 0 : i32
    %15 = tpu.memref_slice %arg5[%9, %c0_i32_6, %c0_i32_11, %c0_i32_12] : memref<2x3x16x128xf32, #tpu.memory_space<vmem>> -> memref<1x1x16x128xf32, #tpu.memory_space<vmem>>
    %16 = tpu.memref_squeeze %15 : memref<1x1x16x128xf32, #tpu.memory_space<vmem>> -> memref<16x128xf32, #tpu.memory_space<vmem>>
    %17 = tpu.memref_slice %arg7[%c0_i32_7, %c0_i32_8, %9] : memref<2x3x2x!tpu.dma_semaphore, #tpu.memory_space<semaphore_mem>> -> memref<1x1x1x!tpu.dma_semaphore, #tpu.memory_space<semaphore_mem>>
    %18 = tpu.memref_squeeze %17 : memref<1x1x1x!tpu.dma_semaphore, #tpu.memory_space<semaphore_mem>> -> memref<!tpu.dma_semaphore, #tpu.memory_space<semaphore_mem>>
    tpu.wait_dma2 semaphore(%18 : memref<!tpu.dma_semaphore, #tpu.memory_space<semaphore_mem>>) src(%14 : memref<16x128xf32, #tpu.memory_space<any>>) dst(%16 : memref<16x128xf32, #tpu.memory_space<vmem>>)
    %c1_i32_13 = arith.constant 1 : i32
    %c1_i32_14 = arith.constant 1 : i32
    %c0_i32_15 = arith.constant 0 : i32
    %c1_i32_16 = arith.constant 1 : i32
    %c0_i32_17 = arith.constant 0 : i32
    %c0_i32_18 = arith.constant 0 : i32
    %19 = tpu.memref_slice %arg2[%c1_i32_13, %c0_i32_17, %c0_i32_18] : memref<3x24x128xf32, #tpu.memory_space<any>> -> memref<1x16x128xf32, #tpu.memory_space<any>>
    %20 = tpu.memref_squeeze %19 : memref<1x16x128xf32, #tpu.memory_space<any>> -> memref<16x128xf32, #tpu.memory_space<any>>
    %c0_i32_19 = arith.constant 0 : i32
    %c0_i32_20 = arith.constant 0 : i32
    %21 = tpu.memref_slice %arg5[%9, %c1_i32_14, %c0_i32_19, %c0_i32_20] : memref<2x3x16x128xf32, #tpu.memory_space<vmem>> -> memref<1x1x16x128xf32, #tpu.memory_space<vmem>>
    %22 = tpu.memref_squeeze %21 : memref<1x1x16x128xf32, #tpu.memory_space<vmem>> -> memref<16x128xf32, #tpu.memory_space<vmem>>
    %23 = tpu.memref_slice %arg7[%c0_i32_15, %c1_i32_16, %9] : memref<2x3x2x!tpu.dma_semaphore, #tpu.memory_space<semaphore_mem>> -> memref<1x1x1x!tpu.dma_semaphore, #tpu.memory_space<semaphore_mem>>
    %24 = tpu.memref_squeeze %23 : memref<1x1x1x!tpu.dma_semaphore, #tpu.memory_space<semaphore_mem>> -> memref<!tpu.dma_semaphore, #tpu.memory_space<semaphore_mem>>
    tpu.wait_dma2 semaphore(%24 : memref<!tpu.dma_semaphore, #tpu.memory_space<semaphore_mem>>) src(%20 : memref<16x128xf32, #tpu.memory_space<any>>) dst(%22 : memref<16x128xf32, #tpu.memory_space<vmem>>)
    %c2_i32_21 = arith.constant 2 : i32
    %c2_i32_22 = arith.constant 2 : i32
    %c0_i32_23 = arith.constant 0 : i32
    %c2_i32_24 = arith.constant 2 : i32
    %c0_i32_25 = arith.constant 0 : i32
    %c0_i32_26 = arith.constant 0 : i32
    %25 = tpu.memref_slice %arg2[%c2_i32_21, %c0_i32_25, %c0_i32_26] : memref<3x24x128xf32, #tpu.memory_space<any>> -> memref<1x16x128xf32, #tpu.memory_space<any>>
    %26 = tpu.memref_squeeze %25 : memref<1x16x128xf32, #tpu.memory_space<any>> -> memref<16x128xf32, #tpu.memory_space<any>>
    %c0_i32_27 = arith.constant 0 : i32
    %c0_i32_28 = arith.constant 0 : i32
    %27 = tpu.memref_slice %arg5[%9, %c2_i32_22, %c0_i32_27, %c0_i32_28] : memref<2x3x16x128xf32, #tpu.memory_space<vmem>> -> memref<1x1x16x128xf32, #tpu.memory_space<vmem>>
    %28 = tpu.memref_squeeze %27 : memref<1x1x16x128xf32, #tpu.memory_space<vmem>> -> memref<16x128xf32, #tpu.memory_space<vmem>>
    %29 = tpu.memref_slice %arg7[%c0_i32_23, %c2_i32_24, %9] : memref<2x3x2x!tpu.dma_semaphore, #tpu.memory_space<semaphore_mem>> -> memref<1x1x1x!tpu.dma_semaphore, #tpu.memory_space<semaphore_mem>>
    %30 = tpu.memref_squeeze %29 : memref<1x1x1x!tpu.dma_semaphore, #tpu.memory_space<semaphore_mem>> -> memref<!tpu.dma_semaphore, #tpu.memory_space<semaphore_mem>>
    tpu.wait_dma2 semaphore(%30 : memref<!tpu.dma_semaphore, #tpu.memory_space<semaphore_mem>>) src(%26 : memref<16x128xf32, #tpu.memory_space<any>>) dst(%28 : memref<16x128xf32, #tpu.memory_space<vmem>>)
    %c0_i32_29 = arith.constant 0 : i32
    %c0_i32_30 = arith.constant 0 : i32
    %c1_i32_31 = arith.constant 1 : i32
    %c0_i32_32 = arith.constant 0 : i32
    %c0_i32_33 = arith.constant 0 : i32
    %c0_i32_34 = arith.constant 0 : i32
    %31 = tpu.memref_slice %arg3[%c0_i32_29, %c0_i32_33, %c0_i32_34] : memref<3x24x128xf32, #tpu.memory_space<any>> -> memref<1x16x128xf32, #tpu.memory_space<any>>
    %32 = tpu.memref_squeeze %31 : memref<1x16x128xf32, #tpu.memory_space<any>> -> memref<16x128xf32, #tpu.memory_space<any>>
    %c0_i32_35 = arith.constant 0 : i32
    %c0_i32_36 = arith.constant 0 : i32
    %33 = tpu.memref_slice %arg6[%9, %c0_i32_30, %c0_i32_35, %c0_i32_36] : memref<2x3x16x128xf32, #tpu.memory_space<vmem>> -> memref<1x1x16x128xf32, #tpu.memory_space<vmem>>
    %34 = tpu.memref_squeeze %33 : memref<1x1x16x128xf32, #tpu.memory_space<vmem>> -> memref<16x128xf32, #tpu.memory_space<vmem>>
    %35 = tpu.memref_slice %arg7[%c1_i32_31, %c0_i32_32, %9] : memref<2x3x2x!tpu.dma_semaphore, #tpu.memory_space<semaphore_mem>> -> memref<1x1x1x!tpu.dma_semaphore, #tpu.memory_space<semaphore_mem>>
    %36 = tpu.memref_squeeze %35 : memref<1x1x1x!tpu.dma_semaphore, #tpu.memory_space<semaphore_mem>> -> memref<!tpu.dma_semaphore, #tpu.memory_space<semaphore_mem>>
    tpu.wait_dma2 semaphore(%36 : memref<!tpu.dma_semaphore, #tpu.memory_space<semaphore_mem>>) src(%32 : memref<16x128xf32, #tpu.memory_space<any>>) dst(%34 : memref<16x128xf32, #tpu.memory_space<vmem>>)
    %c1_i32_37 = arith.constant 1 : i32
    %c1_i32_38 = arith.constant 1 : i32
    %c1_i32_39 = arith.constant 1 : i32
    %c1_i32_40 = arith.constant 1 : i32
    %c0_i32_41 = arith.constant 0 : i32
    %c0_i32_42 = arith.constant 0 : i32
    %37 = tpu.memref_slice %arg3[%c1_i32_37, %c0_i32_41, %c0_i32_42] : memref<3x24x128xf32, #tpu.memory_space<any>> -> memref<1x16x128xf32, #tpu.memory_space<any>>
    %38 = tpu.memref_squeeze %37 : memref<1x16x128xf32, #tpu.memory_space<any>> -> memref<16x128xf32, #tpu.memory_space<any>>
    %c0_i32_43 = arith.constant 0 : i32
    %c0_i32_44 = arith.constant 0 : i32
    %39 = tpu.memref_slice %arg6[%9, %c1_i32_38, %c0_i32_43, %c0_i32_44] : memref<2x3x16x128xf32, #tpu.memory_space<vmem>> -> memref<1x1x16x128xf32, #tpu.memory_space<vmem>>
    %40 = tpu.memref_squeeze %39 : memref<1x1x16x128xf32, #tpu.memory_space<vmem>> -> memref<16x128xf32, #tpu.memory_space<vmem>>
    %41 = tpu.memref_slice %arg7[%c1_i32_39, %c1_i32_40, %9] : memref<2x3x2x!tpu.dma_semaphore, #tpu.memory_space<semaphore_mem>> -> memref<1x1x1x!tpu.dma_semaphore, #tpu.memory_space<semaphore_mem>>
    %42 = tpu.memref_squeeze %41 : memref<1x1x1x!tpu.dma_semaphore, #tpu.memory_space<semaphore_mem>> -> memref<!tpu.dma_semaphore, #tpu.memory_space<semaphore_mem>>
    tpu.wait_dma2 semaphore(%42 : memref<!tpu.dma_semaphore, #tpu.memory_space<semaphore_mem>>) src(%38 : memref<16x128xf32, #tpu.memory_space<any>>) dst(%40 : memref<16x128xf32, #tpu.memory_space<vmem>>)
    %c2_i32_45 = arith.constant 2 : i32
    %c2_i32_46 = arith.constant 2 : i32
    %c1_i32_47 = arith.constant 1 : i32
    %c2_i32_48 = arith.constant 2 : i32
    %c0_i32_49 = arith.constant 0 : i32
    %c0_i32_50 = arith.constant 0 : i32
    %43 = tpu.memref_slice %arg3[%c2_i32_45, %c0_i32_49, %c0_i32_50] : memref<3x24x128xf32, #tpu.memory_space<any>> -> memref<1x16x128xf32, #tpu.memory_space<any>>
    %44 = tpu.memref_squeeze %43 : memref<1x16x128xf32, #tpu.memory_space<any>> -> memref<16x128xf32, #tpu.memory_space<any>>
    %c0_i32_51 = arith.constant 0 : i32
    %c0_i32_52 = arith.constant 0 : i32
    %45 = tpu.memref_slice %arg6[%9, %c2_i32_46, %c0_i32_51, %c0_i32_52] : memref<2x3x16x128xf32, #tpu.memory_space<vmem>> -> memref<1x1x16x128xf32, #tpu.memory_space<vmem>>
    %46 = tpu.memref_squeeze %45 : memref<1x1x16x128xf32, #tpu.memory_space<vmem>> -> memref<16x128xf32, #tpu.memory_space<vmem>>
    %47 = tpu.memref_slice %arg7[%c1_i32_47, %c2_i32_48, %9] : memref<2x3x2x!tpu.dma_semaphore, #tpu.memory_space<semaphore_mem>> -> memref<1x1x1x!tpu.dma_semaphore, #tpu.memory_space<semaphore_mem>>
    %48 = tpu.memref_squeeze %47 : memref<1x1x1x!tpu.dma_semaphore, #tpu.memory_space<semaphore_mem>> -> memref<!tpu.dma_semaphore, #tpu.memory_space<semaphore_mem>>
    tpu.wait_dma2 semaphore(%48 : memref<!tpu.dma_semaphore, #tpu.memory_space<semaphore_mem>>) src(%44 : memref<16x128xf32, #tpu.memory_space<any>>) dst(%46 : memref<16x128xf32, #tpu.memory_space<vmem>>)
    %49 = arith.index_cast %9 : i32 to index
    %c0 = arith.constant 0 : index
    %c0_53 = arith.constant 0 : index
    %c0_54 = arith.constant 0 : index
    %50 = vector.load %arg5[%49, %c0, %c0_53, %c0_54] : memref<2x3x16x128xf32, #tpu.memory_space<vmem>>, vector<1x1x16x128xf32>
    %51 = vector.shape_cast %50 : vector<1x1x16x128xf32> to vector<16x128xf32>
    %52 = arith.index_cast %9 : i32 to index
    %c1 = arith.constant 1 : index
    %c0_55 = arith.constant 0 : index
    %c0_56 = arith.constant 0 : index
    %53 = vector.load %arg5[%52, %c1, %c0_55, %c0_56] : memref<2x3x16x128xf32, #tpu.memory_space<vmem>>, vector<1x1x16x128xf32>
    %54 = vector.shape_cast %53 : vector<1x1x16x128xf32> to vector<16x128xf32>
    %55 = arith.index_cast %9 : i32 to index
    %c2 = arith.constant 2 : index
    %c0_57 = arith.constant 0 : index
    %c0_58 = arith.constant 0 : index
    %56 = vector.load %arg5[%55, %c2, %c0_57, %c0_58] : memref<2x3x16x128xf32, #tpu.memory_space<vmem>>, vector<1x1x16x128xf32>
    %57 = vector.shape_cast %56 : vector<1x1x16x128xf32> to vector<16x128xf32>
    %58 = arith.index_cast %9 : i32 to index
    %c0_59 = arith.constant 0 : index
    %c0_60 = arith.constant 0 : index
    %c0_61 = arith.constant 0 : index
    %59 = vector.load %arg6[%58, %c0_59, %c0_60, %c0_61] : memref<2x3x16x128xf32, #tpu.memory_space<vmem>>, vector<1x1x16x128xf32>
    %60 = vector.shape_cast %59 : vector<1x1x16x128xf32> to vector<16x128xf32>
    %61 = arith.index_cast %9 : i32 to index
    %c1_62 = arith.constant 1 : index
    %c0_63 = arith.constant 0 : index
    %c0_64 = arith.constant 0 : index
    %62 = vector.load %arg6[%61, %c1_62, %c0_63, %c0_64] : memref<2x3x16x128xf32, #tpu.memory_space<vmem>>, vector<1x1x16x128xf32>
    %63 = vector.shape_cast %62 : vector<1x1x16x128xf32> to vector<16x128xf32>
    %64 = arith.index_cast %9 : i32 to index
    %c2_65 = arith.constant 2 : index
    %c0_66 = arith.constant 0 : index
    %c0_67 = arith.constant 0 : index
    %65 = vector.load %arg6[%64, %c2_65, %c0_66, %c0_67] : memref<2x3x16x128xf32, #tpu.memory_space<vmem>>, vector<1x1x16x128xf32>
    %66 = vector.shape_cast %65 : vector<1x1x16x128xf32> to vector<16x128xf32>
    %c15_i32 = arith.constant 15 : i32
    %67 = tpu.dynamic_rotate %51 by %c15_i32 dim 0 : vector<16x128xf32>, i32 -> vector<16x128xf32>
    %68 = arith.addf %51, %67 : vector<16x128xf32>
    %c14_i32 = arith.constant 14 : i32
    %69 = tpu.dynamic_rotate %51 by %c14_i32 dim 0 : vector<16x128xf32>, i32 -> vector<16x128xf32>
    %70 = arith.addf %68, %69 : vector<16x128xf32>
    %71 = vector.extract_strided_slice %70 {offsets = [0, 0], sizes = [8, 128], strides = [1, 1]} : vector<16x128xf32> to vector<8x128xf32>
    %c127_i32 = arith.constant 127 : i32
    %72 = tpu.dynamic_rotate %71 by %c127_i32 dim 1 : vector<8x128xf32>, i32 -> vector<8x128xf32>
    %73 = arith.addf %71, %72 : vector<8x128xf32>
    %c126_i32 = arith.constant 126 : i32
    %74 = tpu.dynamic_rotate %71 by %c126_i32 dim 1 : vector<8x128xf32>, i32 -> vector<8x128xf32>
    %75 = arith.addf %73, %74 : vector<8x128xf32>
    %cst = arith.constant 0.111111112 : f32
    %76 = vector.broadcast %cst : f32 to vector<8x128xf32>
    %77 = arith.mulf %75, %76 : vector<8x128xf32>
    %c15_i32_68 = arith.constant 15 : i32
    %78 = tpu.dynamic_rotate %54 by %c15_i32_68 dim 0 : vector<16x128xf32>, i32 -> vector<16x128xf32>
    %79 = arith.addf %54, %78 : vector<16x128xf32>
    %c14_i32_69 = arith.constant 14 : i32
    %80 = tpu.dynamic_rotate %54 by %c14_i32_69 dim 0 : vector<16x128xf32>, i32 -> vector<16x128xf32>
    %81 = arith.addf %79, %80 : vector<16x128xf32>
    %82 = vector.extract_strided_slice %81 {offsets = [0, 0], sizes = [8, 128], strides = [1, 1]} : vector<16x128xf32> to vector<8x128xf32>
    %c127_i32_70 = arith.constant 127 : i32
    %83 = tpu.dynamic_rotate %82 by %c127_i32_70 dim 1 : vector<8x128xf32>, i32 -> vector<8x128xf32>
    %84 = arith.addf %82, %83 : vector<8x128xf32>
    %c126_i32_71 = arith.constant 126 : i32
    %85 = tpu.dynamic_rotate %82 by %c126_i32_71 dim 1 : vector<8x128xf32>, i32 -> vector<8x128xf32>
    %86 = arith.addf %84, %85 : vector<8x128xf32>
    %cst_72 = arith.constant 0.111111112 : f32
    %87 = vector.broadcast %cst_72 : f32 to vector<8x128xf32>
    %88 = arith.mulf %86, %87 : vector<8x128xf32>
    %c15_i32_73 = arith.constant 15 : i32
    %89 = tpu.dynamic_rotate %57 by %c15_i32_73 dim 0 : vector<16x128xf32>, i32 -> vector<16x128xf32>
    %90 = arith.addf %57, %89 : vector<16x128xf32>
    %c14_i32_74 = arith.constant 14 : i32
    %91 = tpu.dynamic_rotate %57 by %c14_i32_74 dim 0 : vector<16x128xf32>, i32 -> vector<16x128xf32>
    %92 = arith.addf %90, %91 : vector<16x128xf32>
    %93 = vector.extract_strided_slice %92 {offsets = [0, 0], sizes = [8, 128], strides = [1, 1]} : vector<16x128xf32> to vector<8x128xf32>
    %c127_i32_75 = arith.constant 127 : i32
    %94 = tpu.dynamic_rotate %93 by %c127_i32_75 dim 1 : vector<8x128xf32>, i32 -> vector<8x128xf32>
    %95 = arith.addf %93, %94 : vector<8x128xf32>
    %c126_i32_76 = arith.constant 126 : i32
    %96 = tpu.dynamic_rotate %93 by %c126_i32_76 dim 1 : vector<8x128xf32>, i32 -> vector<8x128xf32>
    %97 = arith.addf %95, %96 : vector<8x128xf32>
    %cst_77 = arith.constant 0.111111112 : f32
    %98 = vector.broadcast %cst_77 : f32 to vector<8x128xf32>
    %99 = arith.mulf %97, %98 : vector<8x128xf32>
    %100 = arith.mulf %51, %51 : vector<16x128xf32>
    %c15_i32_78 = arith.constant 15 : i32
    %101 = tpu.dynamic_rotate %100 by %c15_i32_78 dim 0 : vector<16x128xf32>, i32 -> vector<16x128xf32>
    %102 = arith.addf %100, %101 : vector<16x128xf32>
    %c14_i32_79 = arith.constant 14 : i32
    %103 = tpu.dynamic_rotate %100 by %c14_i32_79 dim 0 : vector<16x128xf32>, i32 -> vector<16x128xf32>
    %104 = arith.addf %102, %103 : vector<16x128xf32>
    %105 = vector.extract_strided_slice %104 {offsets = [0, 0], sizes = [8, 128], strides = [1, 1]} : vector<16x128xf32> to vector<8x128xf32>
    %c127_i32_80 = arith.constant 127 : i32
    %106 = tpu.dynamic_rotate %105 by %c127_i32_80 dim 1 : vector<8x128xf32>, i32 -> vector<8x128xf32>
    %107 = arith.addf %105, %106 : vector<8x128xf32>
    %c126_i32_81 = arith.constant 126 : i32
    %108 = tpu.dynamic_rotate %105 by %c126_i32_81 dim 1 : vector<8x128xf32>, i32 -> vector<8x128xf32>
    %109 = arith.addf %107, %108 : vector<8x128xf32>
    %cst_82 = arith.constant 0.111111112 : f32
    %110 = vector.broadcast %cst_82 : f32 to vector<8x128xf32>
    %111 = arith.mulf %109, %110 : vector<8x128xf32>
    %112 = arith.mulf %77, %77 : vector<8x128xf32>
    %113 = arith.subf %111, %112 : vector<8x128xf32>
    %cst_83 = arith.constant 1.11111111E-8 : f32
    %114 = vector.broadcast %cst_83 : f32 to vector<8x128xf32>
    %115 = arith.addf %113, %114 : vector<8x128xf32>
    %116 = arith.mulf %51, %54 : vector<16x128xf32>
    %c15_i32_84 = arith.constant 15 : i32
    %117 = tpu.dynamic_rotate %116 by %c15_i32_84 dim 0 : vector<16x128xf32>, i32 -> vector<16x128xf32>
    %118 = arith.addf %116, %117 : vector<16x128xf32>
    %c14_i32_85 = arith.constant 14 : i32
    %119 = tpu.dynamic_rotate %116 by %c14_i32_85 dim 0 : vector<16x128xf32>, i32 -> vector<16x128xf32>
    %120 = arith.addf %118, %119 : vector<16x128xf32>
    %121 = vector.extract_strided_slice %120 {offsets = [0, 0], sizes = [8, 128], strides = [1, 1]} : vector<16x128xf32> to vector<8x128xf32>
    %c127_i32_86 = arith.constant 127 : i32
    %122 = tpu.dynamic_rotate %121 by %c127_i32_86 dim 1 : vector<8x128xf32>, i32 -> vector<8x128xf32>
    %123 = arith.addf %121, %122 : vector<8x128xf32>
    %c126_i32_87 = arith.constant 126 : i32
    %124 = tpu.dynamic_rotate %121 by %c126_i32_87 dim 1 : vector<8x128xf32>, i32 -> vector<8x128xf32>
    %125 = arith.addf %123, %124 : vector<8x128xf32>
    %cst_88 = arith.constant 0.111111112 : f32
    %126 = vector.broadcast %cst_88 : f32 to vector<8x128xf32>
    %127 = arith.mulf %125, %126 : vector<8x128xf32>
    %128 = arith.mulf %77, %88 : vector<8x128xf32>
    %129 = arith.subf %127, %128 : vector<8x128xf32>
    %130 = arith.mulf %51, %57 : vector<16x128xf32>
    %c15_i32_89 = arith.constant 15 : i32
    %131 = tpu.dynamic_rotate %130 by %c15_i32_89 dim 0 : vector<16x128xf32>, i32 -> vector<16x128xf32>
    %132 = arith.addf %130, %131 : vector<16x128xf32>
    %c14_i32_90 = arith.constant 14 : i32
    %133 = tpu.dynamic_rotate %130 by %c14_i32_90 dim 0 : vector<16x128xf32>, i32 -> vector<16x128xf32>
    %134 = arith.addf %132, %133 : vector<16x128xf32>
    %135 = vector.extract_strided_slice %134 {offsets = [0, 0], sizes = [8, 128], strides = [1, 1]} : vector<16x128xf32> to vector<8x128xf32>
    %c127_i32_91 = arith.constant 127 : i32
    %136 = tpu.dynamic_rotate %135 by %c127_i32_91 dim 1 : vector<8x128xf32>, i32 -> vector<8x128xf32>
    %137 = arith.addf %135, %136 : vector<8x128xf32>
    %c126_i32_92 = arith.constant 126 : i32
    %138 = tpu.dynamic_rotate %135 by %c126_i32_92 dim 1 : vector<8x128xf32>, i32 -> vector<8x128xf32>
    %139 = arith.addf %137, %138 : vector<8x128xf32>
    %cst_93 = arith.constant 0.111111112 : f32
    %140 = vector.broadcast %cst_93 : f32 to vector<8x128xf32>
    %141 = arith.mulf %139, %140 : vector<8x128xf32>
    %142 = arith.mulf %77, %99 : vector<8x128xf32>
    %143 = arith.subf %141, %142 : vector<8x128xf32>
    %144 = arith.mulf %54, %54 : vector<16x128xf32>
    %c15_i32_94 = arith.constant 15 : i32
    %145 = tpu.dynamic_rotate %144 by %c15_i32_94 dim 0 : vector<16x128xf32>, i32 -> vector<16x128xf32>
    %146 = arith.addf %144, %145 : vector<16x128xf32>
    %c14_i32_95 = arith.constant 14 : i32
    %147 = tpu.dynamic_rotate %144 by %c14_i32_95 dim 0 : vector<16x128xf32>, i32 -> vector<16x128xf32>
    %148 = arith.addf %146, %147 : vector<16x128xf32>
    %149 = vector.extract_strided_slice %148 {offsets = [0, 0], sizes = [8, 128], strides = [1, 1]} : vector<16x128xf32> to vector<8x128xf32>
    %c127_i32_96 = arith.constant 127 : i32
    %150 = tpu.dynamic_rotate %149 by %c127_i32_96 dim 1 : vector<8x128xf32>, i32 -> vector<8x128xf32>
    %151 = arith.addf %149, %150 : vector<8x128xf32>
    %c126_i32_97 = arith.constant 126 : i32
    %152 = tpu.dynamic_rotate %149 by %c126_i32_97 dim 1 : vector<8x128xf32>, i32 -> vector<8x128xf32>
    %153 = arith.addf %151, %152 : vector<8x128xf32>
    %cst_98 = arith.constant 0.111111112 : f32
    %154 = vector.broadcast %cst_98 : f32 to vector<8x128xf32>
    %155 = arith.mulf %153, %154 : vector<8x128xf32>
    %156 = arith.mulf %88, %88 : vector<8x128xf32>
    %157 = arith.subf %155, %156 : vector<8x128xf32>
    %cst_99 = arith.constant 1.11111111E-8 : f32
    %158 = vector.broadcast %cst_99 : f32 to vector<8x128xf32>
    %159 = arith.addf %157, %158 : vector<8x128xf32>
    %160 = arith.mulf %54, %57 : vector<16x128xf32>
    %c15_i32_100 = arith.constant 15 : i32
    %161 = tpu.dynamic_rotate %160 by %c15_i32_100 dim 0 : vector<16x128xf32>, i32 -> vector<16x128xf32>
    %162 = arith.addf %160, %161 : vector<16x128xf32>
    %c14_i32_101 = arith.constant 14 : i32
    %163 = tpu.dynamic_rotate %160 by %c14_i32_101 dim 0 : vector<16x128xf32>, i32 -> vector<16x128xf32>
    %164 = arith.addf %162, %163 : vector<16x128xf32>
    %165 = vector.extract_strided_slice %164 {offsets = [0, 0], sizes = [8, 128], strides = [1, 1]} : vector<16x128xf32> to vector<8x128xf32>
    %c127_i32_102 = arith.constant 127 : i32
    %166 = tpu.dynamic_rotate %165 by %c127_i32_102 dim 1 : vector<8x128xf32>, i32 -> vector<8x128xf32>
    %167 = arith.addf %165, %166 : vector<8x128xf32>
    %c126_i32_103 = arith.constant 126 : i32
    %168 = tpu.dynamic_rotate %165 by %c126_i32_103 dim 1 : vector<8x128xf32>, i32 -> vector<8x128xf32>
    %169 = arith.addf %167, %168 : vector<8x128xf32>
    %cst_104 = arith.constant 0.111111112 : f32
    %170 = vector.broadcast %cst_104 : f32 to vector<8x128xf32>
    %171 = arith.mulf %169, %170 : vector<8x128xf32>
    %172 = arith.mulf %88, %99 : vector<8x128xf32>
    %173 = arith.subf %171, %172 : vector<8x128xf32>
    %174 = arith.mulf %57, %57 : vector<16x128xf32>
    %c15_i32_105 = arith.constant 15 : i32
    %175 = tpu.dynamic_rotate %174 by %c15_i32_105 dim 0 : vector<16x128xf32>, i32 -> vector<16x128xf32>
    %176 = arith.addf %174, %175 : vector<16x128xf32>
    %c14_i32_106 = arith.constant 14 : i32
    %177 = tpu.dynamic_rotate %174 by %c14_i32_106 dim 0 : vector<16x128xf32>, i32 -> vector<16x128xf32>
    %178 = arith.addf %176, %177 : vector<16x128xf32>
    %179 = vector.extract_strided_slice %178 {offsets = [0, 0], sizes = [8, 128], strides = [1, 1]} : vector<16x128xf32> to vector<8x128xf32>
    %c127_i32_107 = arith.constant 127 : i32
    %180 = tpu.dynamic_rotate %179 by %c127_i32_107 dim 1 : vector<8x128xf32>, i32 -> vector<8x128xf32>
    %181 = arith.addf %179, %180 : vector<8x128xf32>
    %c126_i32_108 = arith.constant 126 : i32
    %182 = tpu.dynamic_rotate %179 by %c126_i32_108 dim 1 : vector<8x128xf32>, i32 -> vector<8x128xf32>
    %183 = arith.addf %181, %182 : vector<8x128xf32>
    %cst_109 = arith.constant 0.111111112 : f32
    %184 = vector.broadcast %cst_109 : f32 to vector<8x128xf32>
    %185 = arith.mulf %183, %184 : vector<8x128xf32>
    %186 = arith.mulf %99, %99 : vector<8x128xf32>
    %187 = arith.subf %185, %186 : vector<8x128xf32>
    %cst_110 = arith.constant 1.11111111E-8 : f32
    %188 = vector.broadcast %cst_110 : f32 to vector<8x128xf32>
    %189 = arith.addf %187, %188 : vector<8x128xf32>
    %190 = arith.mulf %159, %189 : vector<8x128xf32>
    %191 = arith.mulf %173, %173 : vector<8x128xf32>
    %192 = arith.subf %190, %191 : vector<8x128xf32>
    %193 = arith.mulf %143, %173 : vector<8x128xf32>
    %194 = arith.mulf %129, %189 : vector<8x128xf32>
    %195 = arith.subf %193, %194 : vector<8x128xf32>
    %196 = arith.mulf %129, %173 : vector<8x128xf32>
    %197 = arith.mulf %143, %159 : vector<8x128xf32>
    %198 = arith.subf %196, %197 : vector<8x128xf32>
    %199 = arith.mulf %115, %189 : vector<8x128xf32>
    %200 = arith.mulf %143, %143 : vector<8x128xf32>
    %201 = arith.subf %199, %200 : vector<8x128xf32>
    %202 = arith.mulf %143, %129 : vector<8x128xf32>
    %203 = arith.mulf %115, %173 : vector<8x128xf32>
    %204 = arith.subf %202, %203 : vector<8x128xf32>
    %205 = arith.mulf %115, %159 : vector<8x128xf32>
    %206 = arith.mulf %129, %129 : vector<8x128xf32>
    %207 = arith.subf %205, %206 : vector<8x128xf32>
    %208 = arith.mulf %115, %192 : vector<8x128xf32>
    %209 = arith.mulf %129, %195 : vector<8x128xf32>
    %210 = arith.addf %208, %209 : vector<8x128xf32>
    %211 = arith.mulf %143, %198 : vector<8x128xf32>
    %212 = arith.addf %210, %211 : vector<8x128xf32>
    %213 = tpu.reciprocal %212 {approx = true} : vector<8x128xf32> -> vector<8x128xf32>
    %214 = arith.mulf %192, %213 : vector<8x128xf32>
    %215 = arith.mulf %201, %213 : vector<8x128xf32>
    %216 = arith.mulf %207, %213 : vector<8x128xf32>
    %217 = arith.addf %195, %195 : vector<8x128xf32>
    %218 = arith.mulf %217, %213 : vector<8x128xf32>
    %219 = arith.addf %198, %198 : vector<8x128xf32>
    %220 = arith.mulf %219, %213 : vector<8x128xf32>
    %221 = arith.addf %204, %204 : vector<8x128xf32>
    %222 = arith.mulf %221, %213 : vector<8x128xf32>
    %c15_i32_111 = arith.constant 15 : i32
    %223 = tpu.dynamic_rotate %60 by %c15_i32_111 dim 0 : vector<16x128xf32>, i32 -> vector<16x128xf32>
    %224 = arith.addf %60, %223 : vector<16x128xf32>
    %c14_i32_112 = arith.constant 14 : i32
    %225 = tpu.dynamic_rotate %60 by %c14_i32_112 dim 0 : vector<16x128xf32>, i32 -> vector<16x128xf32>
    %226 = arith.addf %224, %225 : vector<16x128xf32>
    %227 = vector.extract_strided_slice %226 {offsets = [0, 0], sizes = [8, 128], strides = [1, 1]} : vector<16x128xf32> to vector<8x128xf32>
    %c127_i32_113 = arith.constant 127 : i32
    %228 = tpu.dynamic_rotate %227 by %c127_i32_113 dim 1 : vector<8x128xf32>, i32 -> vector<8x128xf32>
    %229 = arith.addf %227, %228 : vector<8x128xf32>
    %c126_i32_114 = arith.constant 126 : i32
    %230 = tpu.dynamic_rotate %227 by %c126_i32_114 dim 1 : vector<8x128xf32>, i32 -> vector<8x128xf32>
    %231 = arith.addf %229, %230 : vector<8x128xf32>
    %c15_i32_115 = arith.constant 15 : i32
    %232 = tpu.dynamic_rotate %63 by %c15_i32_115 dim 0 : vector<16x128xf32>, i32 -> vector<16x128xf32>
    %233 = arith.addf %63, %232 : vector<16x128xf32>
    %c14_i32_116 = arith.constant 14 : i32
    %234 = tpu.dynamic_rotate %63 by %c14_i32_116 dim 0 : vector<16x128xf32>, i32 -> vector<16x128xf32>
    %235 = arith.addf %233, %234 : vector<16x128xf32>
    %236 = vector.extract_strided_slice %235 {offsets = [0, 0], sizes = [8, 128], strides = [1, 1]} : vector<16x128xf32> to vector<8x128xf32>
    %c127_i32_117 = arith.constant 127 : i32
    %237 = tpu.dynamic_rotate %236 by %c127_i32_117 dim 1 : vector<8x128xf32>, i32 -> vector<8x128xf32>
    %238 = arith.addf %236, %237 : vector<8x128xf32>
    %c126_i32_118 = arith.constant 126 : i32
    %239 = tpu.dynamic_rotate %236 by %c126_i32_118 dim 1 : vector<8x128xf32>, i32 -> vector<8x128xf32>
    %240 = arith.addf %238, %239 : vector<8x128xf32>
    %c15_i32_119 = arith.constant 15 : i32
    %241 = tpu.dynamic_rotate %66 by %c15_i32_119 dim 0 : vector<16x128xf32>, i32 -> vector<16x128xf32>
    %242 = arith.addf %66, %241 : vector<16x128xf32>
    %c14_i32_120 = arith.constant 14 : i32
    %243 = tpu.dynamic_rotate %66 by %c14_i32_120 dim 0 : vector<16x128xf32>, i32 -> vector<16x128xf32>
    %244 = arith.addf %242, %243 : vector<16x128xf32>
    %245 = vector.extract_strided_slice %244 {offsets = [0, 0], sizes = [8, 128], strides = [1, 1]} : vector<16x128xf32> to vector<8x128xf32>
    %c127_i32_121 = arith.constant 127 : i32
    %246 = tpu.dynamic_rotate %245 by %c127_i32_121 dim 1 : vector<8x128xf32>, i32 -> vector<8x128xf32>
    %247 = arith.addf %245, %246 : vector<8x128xf32>
    %c126_i32_122 = arith.constant 126 : i32
    %248 = tpu.dynamic_rotate %245 by %c126_i32_122 dim 1 : vector<8x128xf32>, i32 -> vector<8x128xf32>
    %249 = arith.addf %247, %248 : vector<8x128xf32>
    %250 = arith.mulf %60, %60 : vector<16x128xf32>
    %251 = arith.mulf %63, %63 : vector<16x128xf32>
    %252 = arith.addf %250, %251 : vector<16x128xf32>
    %253 = arith.mulf %66, %66 : vector<16x128xf32>
    %254 = arith.addf %252, %253 : vector<16x128xf32>
    %c15_i32_123 = arith.constant 15 : i32
    %255 = tpu.dynamic_rotate %254 by %c15_i32_123 dim 0 : vector<16x128xf32>, i32 -> vector<16x128xf32>
    %256 = arith.addf %254, %255 : vector<16x128xf32>
    %c14_i32_124 = arith.constant 14 : i32
    %257 = tpu.dynamic_rotate %254 by %c14_i32_124 dim 0 : vector<16x128xf32>, i32 -> vector<16x128xf32>
    %258 = arith.addf %256, %257 : vector<16x128xf32>
    %259 = vector.extract_strided_slice %258 {offsets = [0, 0], sizes = [8, 128], strides = [1, 1]} : vector<16x128xf32> to vector<8x128xf32>
    %c127_i32_125 = arith.constant 127 : i32
    %260 = tpu.dynamic_rotate %259 by %c127_i32_125 dim 1 : vector<8x128xf32>, i32 -> vector<8x128xf32>
    %261 = arith.addf %259, %260 : vector<8x128xf32>
    %c126_i32_126 = arith.constant 126 : i32
    %262 = tpu.dynamic_rotate %259 by %c126_i32_126 dim 1 : vector<8x128xf32>, i32 -> vector<8x128xf32>
    %263 = arith.addf %261, %262 : vector<8x128xf32>
    %264 = arith.mulf %231, %231 : vector<8x128xf32>
    %265 = arith.mulf %240, %240 : vector<8x128xf32>
    %266 = arith.addf %264, %265 : vector<8x128xf32>
    %267 = arith.mulf %249, %249 : vector<8x128xf32>
    %268 = arith.addf %266, %267 : vector<8x128xf32>
    %269 = arith.mulf %51, %60 : vector<16x128xf32>
    %c15_i32_127 = arith.constant 15 : i32
    %270 = tpu.dynamic_rotate %269 by %c15_i32_127 dim 0 : vector<16x128xf32>, i32 -> vector<16x128xf32>
    %271 = arith.addf %269, %270 : vector<16x128xf32>
    %c14_i32_128 = arith.constant 14 : i32
    %272 = tpu.dynamic_rotate %269 by %c14_i32_128 dim 0 : vector<16x128xf32>, i32 -> vector<16x128xf32>
    %273 = arith.addf %271, %272 : vector<16x128xf32>
    %274 = vector.extract_strided_slice %273 {offsets = [0, 0], sizes = [8, 128], strides = [1, 1]} : vector<16x128xf32> to vector<8x128xf32>
    %c127_i32_129 = arith.constant 127 : i32
    %275 = tpu.dynamic_rotate %274 by %c127_i32_129 dim 1 : vector<8x128xf32>, i32 -> vector<8x128xf32>
    %276 = arith.addf %274, %275 : vector<8x128xf32>
    %c126_i32_130 = arith.constant 126 : i32
    %277 = tpu.dynamic_rotate %274 by %c126_i32_130 dim 1 : vector<8x128xf32>, i32 -> vector<8x128xf32>
    %278 = arith.addf %276, %277 : vector<8x128xf32>
    %279 = arith.mulf %77, %231 : vector<8x128xf32>
    %280 = arith.subf %278, %279 : vector<8x128xf32>
    %281 = arith.mulf %54, %60 : vector<16x128xf32>
    %c15_i32_131 = arith.constant 15 : i32
    %282 = tpu.dynamic_rotate %281 by %c15_i32_131 dim 0 : vector<16x128xf32>, i32 -> vector<16x128xf32>
    %283 = arith.addf %281, %282 : vector<16x128xf32>
    %c14_i32_132 = arith.constant 14 : i32
    %284 = tpu.dynamic_rotate %281 by %c14_i32_132 dim 0 : vector<16x128xf32>, i32 -> vector<16x128xf32>
    %285 = arith.addf %283, %284 : vector<16x128xf32>
    %286 = vector.extract_strided_slice %285 {offsets = [0, 0], sizes = [8, 128], strides = [1, 1]} : vector<16x128xf32> to vector<8x128xf32>
    %c127_i32_133 = arith.constant 127 : i32
    %287 = tpu.dynamic_rotate %286 by %c127_i32_133 dim 1 : vector<8x128xf32>, i32 -> vector<8x128xf32>
    %288 = arith.addf %286, %287 : vector<8x128xf32>
    %c126_i32_134 = arith.constant 126 : i32
    %289 = tpu.dynamic_rotate %286 by %c126_i32_134 dim 1 : vector<8x128xf32>, i32 -> vector<8x128xf32>
    %290 = arith.addf %288, %289 : vector<8x128xf32>
    %291 = arith.mulf %88, %231 : vector<8x128xf32>
    %292 = arith.subf %290, %291 : vector<8x128xf32>
    %293 = arith.mulf %57, %60 : vector<16x128xf32>
    %c15_i32_135 = arith.constant 15 : i32
    %294 = tpu.dynamic_rotate %293 by %c15_i32_135 dim 0 : vector<16x128xf32>, i32 -> vector<16x128xf32>
    %295 = arith.addf %293, %294 : vector<16x128xf32>
    %c14_i32_136 = arith.constant 14 : i32
    %296 = tpu.dynamic_rotate %293 by %c14_i32_136 dim 0 : vector<16x128xf32>, i32 -> vector<16x128xf32>
    %297 = arith.addf %295, %296 : vector<16x128xf32>
    %298 = vector.extract_strided_slice %297 {offsets = [0, 0], sizes = [8, 128], strides = [1, 1]} : vector<16x128xf32> to vector<8x128xf32>
    %c127_i32_137 = arith.constant 127 : i32
    %299 = tpu.dynamic_rotate %298 by %c127_i32_137 dim 1 : vector<8x128xf32>, i32 -> vector<8x128xf32>
    %300 = arith.addf %298, %299 : vector<8x128xf32>
    %c126_i32_138 = arith.constant 126 : i32
    %301 = tpu.dynamic_rotate %298 by %c126_i32_138 dim 1 : vector<8x128xf32>, i32 -> vector<8x128xf32>
    %302 = arith.addf %300, %301 : vector<8x128xf32>
    %303 = arith.mulf %99, %231 : vector<8x128xf32>
    %304 = arith.subf %302, %303 : vector<8x128xf32>
    %305 = arith.mulf %214, %280 : vector<8x128xf32>
    %306 = arith.mulf %305, %280 : vector<8x128xf32>
    %307 = arith.mulf %215, %292 : vector<8x128xf32>
    %308 = arith.mulf %307, %292 : vector<8x128xf32>
    %309 = arith.addf %306, %308 : vector<8x128xf32>
    %310 = arith.mulf %216, %304 : vector<8x128xf32>
    %311 = arith.mulf %310, %304 : vector<8x128xf32>
    %312 = arith.addf %309, %311 : vector<8x128xf32>
    %313 = arith.mulf %280, %292 : vector<8x128xf32>
    %314 = arith.mulf %218, %313 : vector<8x128xf32>
    %315 = arith.addf %312, %314 : vector<8x128xf32>
    %316 = arith.mulf %280, %304 : vector<8x128xf32>
    %317 = arith.mulf %220, %316 : vector<8x128xf32>
    %318 = arith.addf %315, %317 : vector<8x128xf32>
    %319 = arith.mulf %292, %304 : vector<8x128xf32>
    %320 = arith.mulf %222, %319 : vector<8x128xf32>
    %321 = arith.addf %318, %320 : vector<8x128xf32>
    %322 = arith.mulf %51, %63 : vector<16x128xf32>
    %c15_i32_139 = arith.constant 15 : i32
    %323 = tpu.dynamic_rotate %322 by %c15_i32_139 dim 0 : vector<16x128xf32>, i32 -> vector<16x128xf32>
    %324 = arith.addf %322, %323 : vector<16x128xf32>
    %c14_i32_140 = arith.constant 14 : i32
    %325 = tpu.dynamic_rotate %322 by %c14_i32_140 dim 0 : vector<16x128xf32>, i32 -> vector<16x128xf32>
    %326 = arith.addf %324, %325 : vector<16x128xf32>
    %327 = vector.extract_strided_slice %326 {offsets = [0, 0], sizes = [8, 128], strides = [1, 1]} : vector<16x128xf32> to vector<8x128xf32>
    %c127_i32_141 = arith.constant 127 : i32
    %328 = tpu.dynamic_rotate %327 by %c127_i32_141 dim 1 : vector<8x128xf32>, i32 -> vector<8x128xf32>
    %329 = arith.addf %327, %328 : vector<8x128xf32>
    %c126_i32_142 = arith.constant 126 : i32
    %330 = tpu.dynamic_rotate %327 by %c126_i32_142 dim 1 : vector<8x128xf32>, i32 -> vector<8x128xf32>
    %331 = arith.addf %329, %330 : vector<8x128xf32>
    %332 = arith.mulf %77, %240 : vector<8x128xf32>
    %333 = arith.subf %331, %332 : vector<8x128xf32>
    %334 = arith.mulf %54, %63 : vector<16x128xf32>
    %c15_i32_143 = arith.constant 15 : i32
    %335 = tpu.dynamic_rotate %334 by %c15_i32_143 dim 0 : vector<16x128xf32>, i32 -> vector<16x128xf32>
    %336 = arith.addf %334, %335 : vector<16x128xf32>
    %c14_i32_144 = arith.constant 14 : i32
    %337 = tpu.dynamic_rotate %334 by %c14_i32_144 dim 0 : vector<16x128xf32>, i32 -> vector<16x128xf32>
    %338 = arith.addf %336, %337 : vector<16x128xf32>
    %339 = vector.extract_strided_slice %338 {offsets = [0, 0], sizes = [8, 128], strides = [1, 1]} : vector<16x128xf32> to vector<8x128xf32>
    %c127_i32_145 = arith.constant 127 : i32
    %340 = tpu.dynamic_rotate %339 by %c127_i32_145 dim 1 : vector<8x128xf32>, i32 -> vector<8x128xf32>
    %341 = arith.addf %339, %340 : vector<8x128xf32>
    %c126_i32_146 = arith.constant 126 : i32
    %342 = tpu.dynamic_rotate %339 by %c126_i32_146 dim 1 : vector<8x128xf32>, i32 -> vector<8x128xf32>
    %343 = arith.addf %341, %342 : vector<8x128xf32>
    %344 = arith.mulf %88, %240 : vector<8x128xf32>
    %345 = arith.subf %343, %344 : vector<8x128xf32>
    %346 = arith.mulf %57, %63 : vector<16x128xf32>
    %c15_i32_147 = arith.constant 15 : i32
    %347 = tpu.dynamic_rotate %346 by %c15_i32_147 dim 0 : vector<16x128xf32>, i32 -> vector<16x128xf32>
    %348 = arith.addf %346, %347 : vector<16x128xf32>
    %c14_i32_148 = arith.constant 14 : i32
    %349 = tpu.dynamic_rotate %346 by %c14_i32_148 dim 0 : vector<16x128xf32>, i32 -> vector<16x128xf32>
    %350 = arith.addf %348, %349 : vector<16x128xf32>
    %351 = vector.extract_strided_slice %350 {offsets = [0, 0], sizes = [8, 128], strides = [1, 1]} : vector<16x128xf32> to vector<8x128xf32>
    %c127_i32_149 = arith.constant 127 : i32
    %352 = tpu.dynamic_rotate %351 by %c127_i32_149 dim 1 : vector<8x128xf32>, i32 -> vector<8x128xf32>
    %353 = arith.addf %351, %352 : vector<8x128xf32>
    %c126_i32_150 = arith.constant 126 : i32
    %354 = tpu.dynamic_rotate %351 by %c126_i32_150 dim 1 : vector<8x128xf32>, i32 -> vector<8x128xf32>
    %355 = arith.addf %353, %354 : vector<8x128xf32>
    %356 = arith.mulf %99, %240 : vector<8x128xf32>
    %357 = arith.subf %355, %356 : vector<8x128xf32>
    %358 = arith.mulf %214, %333 : vector<8x128xf32>
    %359 = arith.mulf %358, %333 : vector<8x128xf32>
    %360 = arith.mulf %215, %345 : vector<8x128xf32>
    %361 = arith.mulf %360, %345 : vector<8x128xf32>
    %362 = arith.addf %359, %361 : vector<8x128xf32>
    %363 = arith.mulf %216, %357 : vector<8x128xf32>
    %364 = arith.mulf %363, %357 : vector<8x128xf32>
    %365 = arith.addf %362, %364 : vector<8x128xf32>
    %366 = arith.mulf %333, %345 : vector<8x128xf32>
    %367 = arith.mulf %218, %366 : vector<8x128xf32>
    %368 = arith.addf %365, %367 : vector<8x128xf32>
    %369 = arith.mulf %333, %357 : vector<8x128xf32>
    %370 = arith.mulf %220, %369 : vector<8x128xf32>
    %371 = arith.addf %368, %370 : vector<8x128xf32>
    %372 = arith.mulf %345, %357 : vector<8x128xf32>
    %373 = arith.mulf %222, %372 : vector<8x128xf32>
    %374 = arith.addf %371, %373 : vector<8x128xf32>
    %375 = arith.addf %321, %374 : vector<8x128xf32>
    %376 = arith.mulf %51, %66 : vector<16x128xf32>
    %c15_i32_151 = arith.constant 15 : i32
    %377 = tpu.dynamic_rotate %376 by %c15_i32_151 dim 0 : vector<16x128xf32>, i32 -> vector<16x128xf32>
    %378 = arith.addf %376, %377 : vector<16x128xf32>
    %c14_i32_152 = arith.constant 14 : i32
    %379 = tpu.dynamic_rotate %376 by %c14_i32_152 dim 0 : vector<16x128xf32>, i32 -> vector<16x128xf32>
    %380 = arith.addf %378, %379 : vector<16x128xf32>
    %381 = vector.extract_strided_slice %380 {offsets = [0, 0], sizes = [8, 128], strides = [1, 1]} : vector<16x128xf32> to vector<8x128xf32>
    %c127_i32_153 = arith.constant 127 : i32
    %382 = tpu.dynamic_rotate %381 by %c127_i32_153 dim 1 : vector<8x128xf32>, i32 -> vector<8x128xf32>
    %383 = arith.addf %381, %382 : vector<8x128xf32>
    %c126_i32_154 = arith.constant 126 : i32
    %384 = tpu.dynamic_rotate %381 by %c126_i32_154 dim 1 : vector<8x128xf32>, i32 -> vector<8x128xf32>
    %385 = arith.addf %383, %384 : vector<8x128xf32>
    %386 = arith.mulf %77, %249 : vector<8x128xf32>
    %387 = arith.subf %385, %386 : vector<8x128xf32>
    %388 = arith.mulf %54, %66 : vector<16x128xf32>
    %c15_i32_155 = arith.constant 15 : i32
    %389 = tpu.dynamic_rotate %388 by %c15_i32_155 dim 0 : vector<16x128xf32>, i32 -> vector<16x128xf32>
    %390 = arith.addf %388, %389 : vector<16x128xf32>
    %c14_i32_156 = arith.constant 14 : i32
    %391 = tpu.dynamic_rotate %388 by %c14_i32_156 dim 0 : vector<16x128xf32>, i32 -> vector<16x128xf32>
    %392 = arith.addf %390, %391 : vector<16x128xf32>
    %393 = vector.extract_strided_slice %392 {offsets = [0, 0], sizes = [8, 128], strides = [1, 1]} : vector<16x128xf32> to vector<8x128xf32>
    %c127_i32_157 = arith.constant 127 : i32
    %394 = tpu.dynamic_rotate %393 by %c127_i32_157 dim 1 : vector<8x128xf32>, i32 -> vector<8x128xf32>
    %395 = arith.addf %393, %394 : vector<8x128xf32>
    %c126_i32_158 = arith.constant 126 : i32
    %396 = tpu.dynamic_rotate %393 by %c126_i32_158 dim 1 : vector<8x128xf32>, i32 -> vector<8x128xf32>
    %397 = arith.addf %395, %396 : vector<8x128xf32>
    %398 = arith.mulf %88, %249 : vector<8x128xf32>
    %399 = arith.subf %397, %398 : vector<8x128xf32>
    %400 = arith.mulf %57, %66 : vector<16x128xf32>
    %c15_i32_159 = arith.constant 15 : i32
    %401 = tpu.dynamic_rotate %400 by %c15_i32_159 dim 0 : vector<16x128xf32>, i32 -> vector<16x128xf32>
    %402 = arith.addf %400, %401 : vector<16x128xf32>
    %c14_i32_160 = arith.constant 14 : i32
    %403 = tpu.dynamic_rotate %400 by %c14_i32_160 dim 0 : vector<16x128xf32>, i32 -> vector<16x128xf32>
    %404 = arith.addf %402, %403 : vector<16x128xf32>
    %405 = vector.extract_strided_slice %404 {offsets = [0, 0], sizes = [8, 128], strides = [1, 1]} : vector<16x128xf32> to vector<8x128xf32>
    %c127_i32_161 = arith.constant 127 : i32
    %406 = tpu.dynamic_rotate %405 by %c127_i32_161 dim 1 : vector<8x128xf32>, i32 -> vector<8x128xf32>
    %407 = arith.addf %405, %406 : vector<8x128xf32>
    %c126_i32_162 = arith.constant 126 : i32
    %408 = tpu.dynamic_rotate %405 by %c126_i32_162 dim 1 : vector<8x128xf32>, i32 -> vector<8x128xf32>
    %409 = arith.addf %407, %408 : vector<8x128xf32>
    %410 = arith.mulf %99, %249 : vector<8x128xf32>
    %411 = arith.subf %409, %410 : vector<8x128xf32>
    %412 = arith.mulf %214, %387 : vector<8x128xf32>
    %413 = arith.mulf %412, %387 : vector<8x128xf32>
    %414 = arith.mulf %215, %399 : vector<8x128xf32>
    %415 = arith.mulf %414, %399 : vector<8x128xf32>
    %416 = arith.addf %413, %415 : vector<8x128xf32>
    %417 = arith.mulf %216, %411 : vector<8x128xf32>
    %418 = arith.mulf %417, %411 : vector<8x128xf32>
    %419 = arith.addf %416, %418 : vector<8x128xf32>
    %420 = arith.mulf %387, %399 : vector<8x128xf32>
    %421 = arith.mulf %218, %420 : vector<8x128xf32>
    %422 = arith.addf %419, %421 : vector<8x128xf32>
    %423 = arith.mulf %387, %411 : vector<8x128xf32>
    %424 = arith.mulf %220, %423 : vector<8x128xf32>
    %425 = arith.addf %422, %424 : vector<8x128xf32>
    %426 = arith.mulf %399, %411 : vector<8x128xf32>
    %427 = arith.mulf %222, %426 : vector<8x128xf32>
    %428 = arith.addf %425, %427 : vector<8x128xf32>
    %429 = arith.addf %375, %428 : vector<8x128xf32>
    %430 = arith.addf %268, %429 : vector<8x128xf32>
    %cst_163 = arith.constant 0.111111112 : f32
    %431 = vector.broadcast %cst_163 : f32 to vector<8x128xf32>
    %432 = arith.mulf %431, %430 : vector<8x128xf32>
    %433 = arith.subf %263, %432 : vector<8x128xf32>
    %c0_164 = arith.constant 0 : index
    %c0_165 = arith.constant 0 : index
    %434 = vector.load %arg9[%c0_164, %c0_165] : memref<8x128xf32, #tpu.memory_space<vmem>>, vector<8x128xf32>
    %435 = arith.mulf %433, %434 : vector<8x128xf32>
    %c1_i32_166 = arith.constant 1 : i32
    %436 = arith.muli %arg0, %c1_i32_166 : i32
    %437 = arith.addi %436, %arg1 : i32
    %c8_i32 = arith.constant 8 : i32
    %438 = arith.muli %437, %c8_i32 : i32
    %c8_i32_167 = arith.constant 8 : i32
    %439 = arith.addi %438, %c8_i32_167 : i32
    %c14_i32_168 = arith.constant 14 : i32
    %440 = arith.cmpi sle, %439, %c14_i32_168 : i32
    %441 = arith.extui %440 : i1 to i32
    %c0_i32_169 = arith.constant 0 : i32
    %442 = arith.cmpi ne, %441, %c0_i32_169 : i32
    scf.if %442 {
      %c0_173 = arith.constant 0 : index
      %c0_174 = arith.constant 0 : index
      %449 = vector.load %arg8[%c0_173, %c0_174] : memref<8x128xf32, #tpu.memory_space<vmem>>, vector<8x128xf32>
      %450 = arith.addf %449, %435 : vector<8x128xf32>
      %c0_175 = arith.constant 0 : index
      %c0_176 = arith.constant 0 : index
      %451 = vector.load %arg8[%c0_175, %c0_176] : memref<8x128xf32, #tpu.memory_space<vmem>>, vector<8x128xf32>
      tpu.vector_store %arg8[%c0_175, %c0_176], %450 {strides = array<i32>} : memref<8x128xf32, #tpu.memory_space<vmem>>, vector<8x128xf32>,
    } else {
    }
    %true = arith.constant true
    %443 = arith.xori %440, %true : i1
    %444 = arith.extui %443 : i1 to i32
    %c0_i32_170 = arith.constant 0 : i32
    %445 = arith.cmpi ne, %444, %c0_i32_170 : i32
    scf.if %445 {
      %449 = tpu.iota {dimensions = array<i32: 0>} : vector<8x128xi32>
      %450 = vector.broadcast %438 : i32 to vector<8x128xi32>
      %451 = arith.addi %449, %450 : vector<8x128xi32>
      %c0_173 = arith.constant 0 : index
      %c0_174 = arith.constant 0 : index
      %452 = vector.load %arg8[%c0_173, %c0_174] : memref<8x128xf32, #tpu.memory_space<vmem>>, vector<8x128xf32>
      %c14_i32_175 = arith.constant 14 : i32
      %453 = vector.broadcast %c14_i32_175 : i32 to vector<8x128xi32>
      %454 = arith.cmpi slt, %451, %453 : vector<8x128xi32>
      %cst_176 = arith.constant 0.000000e+00 : f32
      %455 = vector.broadcast %cst_176 : f32 to vector<8x128xf32>
      %456 = arith.select %454, %435, %455 : vector<8x128xi1>, vector<8x128xf32>
      %457 = arith.addf %452, %456 : vector<8x128xf32>
      %c0_177 = arith.constant 0 : index
      %c0_178 = arith.constant 0 : index
      %458 = vector.load %arg8[%c0_177, %c0_178] : memref<8x128xf32, #tpu.memory_space<vmem>>, vector<8x128xf32>
      tpu.vector_store %arg8[%c0_177, %c0_178], %457 {strides = array<i32>} : memref<8x128xf32, #tpu.memory_space<vmem>>, vector<8x128xf32>,
    } else {
    }
    %c0_i32_171 = arith.constant 0 : i32
    %446 = arith.cmpi eq, %arg1, %c0_i32_171 : i32
    %447 = arith.extui %446 : i1 to i32
    %c0_i32_172 = arith.constant 0 : i32
    %448 = arith.cmpi ne, %447, %c0_i32_172 : i32
    scf.if %448 {
      %c0_173 = arith.constant 0 : index
      %c0_174 = arith.constant 0 : index
      %449 = vector.load %arg8[%c0_173, %c0_174] : memref<8x128xf32, #tpu.memory_space<vmem>>, vector<8x128xf32>
      %450 = vector.shape_cast %449 : vector<8x128xf32> to vector<1x8x128xf32>
      %cst_175 = arith.constant dense<0.000000e+00> : vector<1xf32>
      %451 = vector.multi_reduction <add>, %450, %cst_175 [1, 2] : vector<1x8x128xf32> to vector<1xf32>
      %452 = vector.shape_cast %451 : vector<1xf32> to vector<1x1x1xf32>
      %453 = vector.extract %452[0, 0, 0] : f32 from vector<1x1x1xf32>
      %454 = vector.broadcast %453 : f32 to vector<1x8x128xf32>
      %c0_176 = arith.constant 0 : index
      %c0_177 = arith.constant 0 : index
      %c0_178 = arith.constant 0 : index
      %455 = vector.load %arg4[%c0_176, %c0_177, %c0_178] : memref<1x8x128xf32, #tpu.memory_space<vmem>>, vector<1x8x128xf32>
      tpu.vector_store %arg4[%c0_176, %c0_177, %c0_178], %454 {strides = array<i32>} : memref<1x8x128xf32, #tpu.memory_space<vmem>>, vector<1x8x128xf32>,
    } else {
    }
    return
  }
  func.func @transform_2(%arg0: i32, %arg1: i32) -> (i32, i32, i32) {
    %c0_i32 = arith.constant 0 : i32
    %c0_i32_0 = arith.constant 0 : i32
    %c0_i32_1 = arith.constant 0 : i32
    return %arg0, %c0_i32, %c0_i32_0 : i32, i32, i32
  }
}

</mosaic_0001>

<bundles_post_ra>
// kernel: matting_laplacian_loss.1
= control target key start
LH: loop header
LB: loop body
LE: loop exit
PB: predicated region body
PF: predicated region fallthrough
CT: control target
= control target key end

     0   :  { %s1084_s9 = smov 0   ;;  %s1086_s10 = smov 0   ;;  %s1575_s0 = inlined_call_operand.vmem [shape: f32[3,24,128], index: 0, kind: input, shape index: {}]   ;;  %s1576_s1 = inlined_call_operand.vmem [shape: f32[3,24,128], index: 1, kind: input, shape index: {}]   ;;  %s1577_s2 = inlined_call_operand.vmem [shape: f32[2,8,128], index: 2, kind: output, shape index: {}]  }
   0x1 LB: > { %s21_s11 = sadd.s32 1, %s1060_s9  ;;  %p982_p1 = scmp.ge.s32.totalorder %s1064_s10, 2  ;;  %s1064_s10 = sphi %s1086_s10, %s12_s10   ;;  %s1060_s9 = sphi %s1084_s9, %s1578_s9  }
   0x2   : > { %p23_p0 = scmp.ge.s32.totalorder %s21_s11, 2  ;;  %p54_p2 = scmp.lt.s32.totalorder (!%p982_p1), %s1060_s9, 1 }
   0x3   : > { %47 = sbr.rel (%p982_p1) target bundleno = 491 (0x1eb), region = 12  ;;  %s1095_s12 = sshll.u32 (!%p982_p1), %s1060_s9, 3 }
   0x4   : > { %s1580_s11 = smov (%p23_p0, %s21_s11), 0  ;;  %s82_s15 = scalar_lea.vmem (!%p982_p1), %s1575_s0, %s1095_s12 }
   0x8   : > { %v75_v0 = vlaneseq  ;;  %v1066_v1 = vmov 0.0   ;;  %s1582_s9 = smov (!%p54_p2, %s1060_s9), 1  ;;  %v1101_v3 = vld [vmem:[%s82_s15] sm:$0xff]  ;;  %v1103_v4 = vld [vmem:[%s82_s15 + $0x8] sm:$0xff] }
   0x9   : > { %74 = vst [vmem:[#allocation5] sm:$0xff] %v1066_v1  ;;  %s983_s16 = sshll.u32 %s1582_s9, 3 }
   0xa   : > { %v76_v2 = vand.u32 127, %v75_v0  ;;  %s1108_s19 = scalar_lea.vmem %s1577_s2, %s983_s16 }
   0xc   : > { %vm77_vm0 = vcmp.lt.s32.totalorder %v76_v2, 14 }
   0xd   : > { %v1110_v5 = vsel %vm77_vm0, 1.0, %v1066_v1 }
   0xe   : > { %102 = vsyncadd [#allocation4], 256  ;;  %v1112_v6 = vld [vmem:[%s82_s15 + $0x18] sm:$0xff]  ;;  %v1114_v7 = vld [vmem:[%s82_s15 + $0x20] sm:$0xff] }
   0xf   : > { %126 = vsyncadd [#allocation4 + $0x2], 256  ;;  %v1116_v8 = vld [vmem:[%s82_s15 + $0x30] sm:$0xff]  ;;  %v1118_v9 = vld [vmem:[%s82_s15 + $0x38] sm:$0xff] }
  0x10   : > { %150 = vsyncadd [#allocation4 + $0x4], 256  ;;  %s151_s22 = scalar_lea.vmem %s1576_s1, %s1095_s12 }
  0x11   : > { %v1124_v10 = vld [vmem:[%s151_s22] sm:$0xff]  ;;  %v1126_v11 = vld [vmem:[%s151_s22 + $0x8] sm:$0xff] }
  0x12   : > { %172 = vsyncadd [#allocation4 + $0x6], 256  ;;  %v1128_v12 = vld [vmem:[%s151_s22 + $0x18] sm:$0xff]  ;;  %v1130_v13 = vld [vmem:[%s151_s22 + $0x20] sm:$0xff] }
  0x13   : > { %195 = vsyncadd [#allocation4 + $0x8], 256  ;;  %v1132_v14 = vld [vmem:[%s151_s22 + $0x30] sm:$0xff]  ;;  %v1134_v15 = vld [vmem:[%s151_s22 + $0x38] sm:$0xff] }
  0x14   : > { %218 = vsyncadd [#allocation4 + $0xa], 256 }
  0x15   : > { %1046 = dma.done.wait [#allocation4], 256 }
  0x16   : > { %1047 = vsyncadd [#allocation4], 4294967040 }
  0x17   : > { %1048 = dma.done.wait [#allocation4 + $0x2], 256 }
  0x18   : > { %1049 = vsyncadd [#allocation4 + $0x2], 4294967040 }
  0x19   : > { %1050 = dma.done.wait [#allocation4 + $0x4], 256 }
  0x1a   : > { %1051 = vsyncadd [#allocation4 + $0x4], 4294967040 }
  0x1b   : > { %1052 = dma.done.wait [#allocation4 + $0x6], 256 }
  0x1c   : > { %1053 = vsyncadd [#allocation4 + $0x6], 4294967040 }
  0x1d   : > { %1054 = dma.done.wait [#allocation4 + $0x8], 256 }
  0x1e   : > { %1055 = vsyncadd [#allocation4 + $0x8], 4294967040  ;;  %v1136_v16 = vshrl.u32 %v75_v0, 7  ;;  %v283_v17 = vrot.slane %v1112_v6, 1  ;;  %v284_v18 = vrot.slane %v1114_v7, 1  ;;  %v287_v19 = vrot.slane %v1112_v6, 2 }
  0x1f   : > { %v288_v20 = vrot.slane %v1114_v7, 2  ;;  %v264_v21 = vrot.slane %v1101_v3, 1  ;;  %v265_v22 = vrot.slane %v1103_v4, 1  ;;  %v271_v23 = vrot.slane %v1101_v3, 2 }
  0x20   : > { %1056 = dma.done.wait [#allocation4 + $0xa], 256 }
  0x21   : > { %1057 = vsyncadd [#allocation4 + $0xa], 4294967040  ;;  %vm268_vm1 = vcmp.lt.s32.totalorder %v1136_v16, 7  ;;  %vm273_vm2 = vcmp.lt.s32.totalorder %v1136_v16, 6  ;;  %v272_v24 = vrot.slane %v1103_v4, 2  ;;  %v298_v25 = vrot.slane %v1116_v8, 1 }
  0x22   : > { %v285_v26 = vsel %vm268_vm1, %v283_v17, %v284_v18  ;;  %v289_v27 = vsel %vm273_vm2, %v287_v19, %v288_v20  ;;  %v269_v28 = vsel %vm268_vm1, %v264_v21, %v265_v22  ;;  %v299_v29 = vrot.slane %v1118_v9, 1  ;;  %s1067_s23 = smov 127   ;;  %s1068_s24 = smov 126  }
  0x23   : > { %v286_v30 = vadd.f32 %v1112_v6, %v285_v26  ;;  %v270_v31 = vadd.f32 %v269_v28, %v1101_v3  ;;  %v274_v32 = vsel %vm273_vm2, %v271_v23, %v272_v24  ;;  %v302_v33 = vrot.slane %v1116_v8, 2  ;;  %s756_s25 = sadd.s32 8, %s1095_s12 }
  0x24   : > { %v300_v34 = vsel %vm268_vm1, %v298_v25, %v299_v29  ;;  %v303_v35 = vrot.slane %v1118_v9, 2  ;;  %v313_v36 = vmul.f32 %v1101_v3, %v1101_v3  ;;  %v314_v37 = vmul.f32 %v1103_v4, %v1103_v4  ;;  %p999_p3 = scmp.gt.s32.totalorder %s756_s25, 14 }
  0x25   : > { %v1168_v38 = vadd.f32 %v289_v27, %v286_v30  ;;  %v1170_v39 = vadd.f32 %v274_v32, %v270_v31  ;;  %v301_v40 = vadd.f32 %v1116_v8, %v300_v34  ;;  %v333_v42 = vmul.f32 %v1112_v6, %v1101_v3 }
  0x26   : > { %v304_v41 = vsel %vm273_vm2, %v302_v33, %v303_v35  ;;  %v334_v44 = vmul.f32 %v1114_v7, %v1103_v4  ;;  %v315_v45 = vrot.slane %v313_v36, 1  ;;  %v316_v46 = vrot.slane %v314_v37, 1 }
  0x27   : > { %291 = vrot.lane.b32.xlu1 %v1168_v38, %s1067_s23  ;;  %276 = vrot.lane.b32.xlu0 %v1170_v39, %s1067_s23  ;;  %v1181_v43 = vadd.f32 %v304_v41, %v301_v40  ;;  %v335_v47 = vrot.slane %v333_v42, 1  ;;  %v319_v49 = vrot.slane %v313_v36, 2  ;;  %v320_v51 = vrot.slane %v314_v37, 2 }
  0x28   : > { %v336_v48 = vrot.slane %v334_v44, 1  ;;  %v317_v50 = vsel %vm268_vm1, %v315_v45, %v316_v46  ;;  %v352_v52 = vmul.f32 %v1116_v8, %v1101_v3  ;;  %v353_v53 = vmul.f32 %v1118_v9, %v1103_v4 }
  0x29   : > { %306 = vrot.lane.b32.xlu2 %v1181_v43, %s1067_s23  ;;  %v339_v55 = vrot.slane %v333_v42, 2  ;;  %v340_v56 = vrot.slane %v334_v44, 2  ;;  %v318_v57 = vadd.f32 %v317_v50, %v313_v36  ;;  %v321_v58 = vsel %vm273_vm2, %v319_v49, %v320_v51 }
  0x2a   : > { %v337_v54 = vsel %vm268_vm1, %v335_v47, %v336_v48  ;;  %v354_v59 = vrot.slane %v352_v52, 1  ;;  %v355_v60 = vrot.slane %v353_v53, 1  ;;  %v358_v0 = vrot.slane %v352_v52, 2 }
  0x2b   : > { %v338_v61 = vadd.f32 %v337_v54, %v333_v42  ;;  %v341_v62 = vsel %vm273_vm2, %v339_v55, %v340_v56  ;;  %v1205_v63 = vadd.f32 %v321_v58, %v318_v57  ;;  %v359_v2 = vrot.slane %v353_v53, 2 }
  0x2c   : > { %v356_v1 = vsel %vm268_vm1, %v354_v59, %v355_v60  ;;  %v371_v17 = vmul.f32 %v1112_v6, %v1112_v6  ;;  %v372_v18 = vmul.f32 %v1114_v7, %v1114_v7  ;;  %v410_v20 = vmul.f32 %v1116_v8, %v1116_v8 }
  0x2d   : > { %v1213_v19 = vadd.f32 %v341_v62, %v338_v61  ;;  %v411_v21 = vmul.f32 %v1118_v9, %v1118_v9  ;;  %v357_v22 = vadd.f32 %v356_v1, %v352_v52  ;;  %v360_v23 = vsel %vm273_vm2, %v358_v0, %v359_v2 }
  0x2e   : > { %v373_v24 = vrot.slane %v371_v17, 1  ;;  %v374_v25 = vrot.slane %v372_v18, 1  ;;  %v412_v26 = vrot.slane %v410_v20, 1  ;;  %v377_v29 = vrot.slane %v371_v17, 2 }
  0x2f   : > { %294 = vrot.lane.b32.xlu1 %v1168_v38, %s1068_s24  ;;  %279 = vrot.lane.b32.xlu0 %v1170_v39, %s1068_s24  ;;  %v413_v27 = vrot.slane %v411_v21, 1  ;;  %v1227_v28 = vadd.f32 %v360_v23, %v357_v22  ;;  %v378_v31 = vrot.slane %v372_v18, 2  ;;  %v391_v32 = vmul.f32 %v1116_v8, %v1112_v6 }
  0x30   : > { %v375_v30 = vsel %vm268_vm1, %v373_v24, %v374_v25  ;;  %v392_v33 = vmul.f32 %v1118_v9, %v1114_v7  ;;  %v416_v35 = vrot.slane %v410_v20, 2  ;;  %v417_v36 = vrot.slane %v411_v21, 2 }
  0x31   : > { %309 = vrot.lane.b32.xlu2 %v1181_v43, %s1068_s24  ;;  %v414_v34 = vsel %vm268_vm1, %v412_v26, %v413_v27  ;;  %v376_v37 = vadd.f32 %v375_v30, %v371_v17  ;;  %v379_v40 = vsel %vm273_vm2, %v377_v29, %v378_v31  ;;  %v393_v41 = vrot.slane %v391_v32, 1 }
  0x32   : > { %v394_v42 = vrot.slane %v392_v33, 1  ;;  %v415_v44 = vadd.f32 %v414_v34, %v410_v20  ;;  %v418_v45 = vsel %vm273_vm2, %v416_v35, %v417_v36  ;;  %v397_v48 = vrot.slane %v391_v32, 2 }
  0x33   : > { %v1247_v46 = vadd.f32 %v379_v40, %v376_v37  ;;  %v398_v49 = vrot.slane %v392_v33, 2  ;;  %v463_v53 = vrot.slane %v1124_v10, 1  ;;  %v464_v54 = vrot.slane %v1126_v11, 1 }
  0x34   : > { %v395_v47 = vsel %vm268_vm1, %v393_v41, %v394_v42  ;;  %v1251_v50 = vadd.f32 %v418_v45, %v415_v44  ;;  %v477_v55 = vrot.slane %v1128_v12, 1  ;;  %v478_v56 = vrot.slane %v1130_v13, 1 }
  0x35   : > { %v396_v51 = vadd.f32 %v395_v47, %v391_v32  ;;  %v399_v52 = vsel %vm273_vm2, %v397_v48, %v398_v49  ;;  %v465_v58 = vsel %vm268_vm1, %v463_v53, %v464_v54  ;;  %v467_v59 = vrot.slane %v1124_v10, 2 }
  0x36   : > { %v468_v60 = vrot.slane %v1126_v11, 2  ;;  %v481_v61 = vrot.slane %v1128_v12, 2  ;;  %v479_v62 = vsel %vm268_vm1, %v477_v55, %v478_v56  ;;  %v482_v0 = vrot.slane %v1130_v13, 2 }
  0x37   : > { %326 = vrot.lane.b32.xlu1 %v1205_v63, %s1068_s24  ;;  %323 = vrot.lane.b32.xlu0 %v1205_v63, %s1067_s23  ;;  %v1265_v57 = vadd.f32 %v399_v52, %v396_v51  ;;  %v534_v1 = vmul.f32 %v1124_v10, %v1101_v3  ;;  %v535_v2 = vmul.f32 %v1126_v11, %v1103_v4  ;;  %v491_v18 = vrot.slane %v1132_v14, 1 }
  0x38   : > { %v466_v17 = vadd.f32 %v465_v58, %v1124_v10  ;;  %v492_v20 = vrot.slane %v1134_v15, 1  ;;  %v469_v21 = vsel %vm273_vm2, %v467_v59, %v468_v60  ;;  %v480_v22 = vadd.f32 %v1128_v12, %v479_v62 }
  0x39   : > { %343 = vrot.lane.b32.xlu2 %v1213_v19, %s1067_s23  ;;  %v483_v23 = vsel %vm273_vm2, %v481_v61, %v482_v0  ;;  %v536_v24 = vrot.slane %v534_v1, 1  ;;  %v537_v25 = vrot.slane %v535_v2, 1  ;;  %v495_v29 = vrot.slane %v1132_v14, 2 }
  0x3a   : > { %v1293_v26 = vadd.f32 %v469_v21, %v466_v17  ;;  %v493_v27 = vsel %vm268_vm1, %v491_v18, %v492_v20  ;;  %v496_v30 = vrot.slane %v1134_v15, 2  ;;  %v605_v31 = vmul.f32 %v1128_v12, %v1101_v3 }
  0x3b   : > { %v606_v32 = vmul.f32 %v1130_v13, %v1103_v4  ;;  %v552_v33 = vmul.f32 %v1112_v6, %v1124_v10  ;;  %v553_v34 = vmul.f32 %v1114_v7, %v1126_v11  ;;  %v1307_v35 = vadd.f32 %v483_v23, %v480_v22 }
  0x3c   : > { %v540_v36 = vrot.slane %v534_v1, 2  ;;  %v538_v37 = vsel %vm268_vm1, %v536_v24, %v537_v25  ;;  %v541_v40 = vrot.slane %v535_v2, 2  ;;  %v623_v41 = vmul.f32 %v1128_v12, %v1112_v6 }
  0x3d   : > { %v624_v42 = vmul.f32 %v1130_v13, %v1114_v7  ;;  %v494_v44 = vadd.f32 %v1132_v14, %v493_v27  ;;  %v497_v45 = vsel %vm273_vm2, %v495_v29, %v496_v30  ;;  %v607_v47 = vrot.slane %v605_v31, 1 }
  0x3e   : > { %v608_v48 = vrot.slane %v606_v32, 1  ;;  %v554_v49 = vrot.slane %v552_v33, 1  ;;  %v555_v51 = vrot.slane %v553_v34, 1  ;;  %v539_v52 = vadd.f32 %v538_v37, %v534_v1 }
  0x3f   : > { %362 = vrot.lane.b32.xlu1 %v1227_v28, %s1067_s23  ;;  %346 = vrot.lane.b32.xlu0 %v1213_v19, %s1068_s24  ;;  %v542_v53 = vsel %vm273_vm2, %v540_v36, %v541_v40  ;;  %v625_v54 = vrot.slane %v623_v41, 1  ;;  %v626_v55 = vrot.slane %v624_v42, 1  ;;  %v1326_v56 = vadd.f32 %v497_v45, %v494_v44 }
  0x40   : > { %v611_v58 = vrot.slane %v605_v31, 2  ;;  %v612_v59 = vrot.slane %v606_v32, 2  ;;  %v609_v60 = vsel %vm268_vm1, %v607_v47, %v608_v48  ;;  %v556_v61 = vsel %vm268_vm1, %v554_v49, %v555_v51 }
  0x41   : > { %365 = vrot.lane.b32.xlu2 %v1227_v28, %s1068_s24  ;;  %v558_v62 = vrot.slane %v552_v33, 2  ;;  %v559_v0 = vrot.slane %v553_v34, 2  ;;  %v1332_v2 = vadd.f32 %v542_v53, %v539_v52  ;;  %v627_v1 = vsel %vm268_vm1, %v625_v54, %v626_v55 }
  0x42   : > { %v629_v17 = vrot.slane %v623_v41, 2  ;;  %v630_v18 = vrot.slane %v624_v42, 2  ;;  %v610_v20 = vadd.f32 %v609_v60, %v605_v31  ;;  %v557_v21 = vadd.f32 %v556_v61, %v552_v33 }
  0x43   : > { %v613_v22 = vsel %vm273_vm2, %v611_v58, %v612_v59  ;;  %v560_v23 = vsel %vm273_vm2, %v558_v62, %v559_v0  ;;  %v628_v24 = vadd.f32 %v627_v1, %v623_v41  ;;  %v570_v27 = vmul.f32 %v1116_v8, %v1124_v10 }
  0x44   : > { %v631_v25 = vsel %vm273_vm2, %v629_v17, %v630_v18  ;;  %v571_v29 = vmul.f32 %v1118_v9, %v1126_v11  ;;  %v1352_v30 = vadd.f32 %v613_v22, %v610_v20  ;;  %v1354_v31 = vadd.f32 %v560_v23, %v557_v21 }
  0x45   : > { %v1356_v32 = vadd.f32 %v631_v25, %v628_v24  ;;  %v572_v33 = vrot.slane %v570_v27, 1  ;;  %v576_v37 = vrot.slane %v570_v27, 2  ;;  %v677_v41 = vmul.f32 %v1132_v14, %v1101_v3 }
  0x46   : > { %v573_v34 = vrot.slane %v571_v29, 1  ;;  %v577_v40 = vrot.slane %v571_v29, 2  ;;  %v678_v42 = vmul.f32 %v1134_v15, %v1103_v4  ;;  %v641_v44 = vmul.f32 %v1128_v12, %v1116_v8 }
  0x47   : > { %384 = vrot.lane.b32.xlu1 %v1247_v46, %s1068_s24  ;;  %381 = vrot.lane.b32.xlu0 %v1247_v46, %s1067_s23  ;;  %v642_v45 = vmul.f32 %v1130_v13, %v1118_v9  ;;  %v679_v3 = vrot.slane %v677_v41, 1  ;;  %v695_v52 = vmul.f32 %v1132_v14, %v1112_v6  ;;  %v696_v53 = vmul.f32 %v1134_v15, %v1114_v7 }
  0x48   : > { %v574_v36 = vsel %vm268_vm1, %v572_v33, %v573_v34  ;;  %v578_v48 = vsel %vm273_vm2, %v576_v37, %v577_v40  ;;  %v680_v49 = vrot.slane %v678_v42, 1  ;;  %v643_v51 = vrot.slane %v641_v44, 1 }
  0x49   : > { %420 = vrot.lane.b32.xlu2 %v1251_v50, %s1067_s23  ;;  %v575_v47 = vadd.f32 %v574_v36, %v570_v27  ;;  %v644_v4 = vrot.slane %v642_v45, 1  ;;  %v683_v55 = vrot.slane %v677_v41, 2  ;;  %v684_v58 = vrot.slane %v678_v42, 2 }
  0x4a   : > { %v681_v59 = vsel %vm268_vm1, %v679_v3, %v680_v49  ;;  %v647_v61 = vrot.slane %v641_v44, 2  ;;  %v648_v62 = vrot.slane %v642_v45, 2  ;;  %v697_v0 = vrot.slane %v695_v52, 1 }
  0x4b   : > { %v1386_v54 = vadd.f32 %v578_v48, %v575_v47  ;;  %v645_v60 = vsel %vm268_vm1, %v643_v51, %v644_v4  ;;  %v698_v6 = vrot.slane %v696_v53, 1  ;;  %v682_v1 = vadd.f32 %v681_v59, %v677_v41 }
  0x4c   : > { %v646_v17 = vadd.f32 %v645_v60, %v641_v44  ;;  %v685_v7 = vsel %vm273_vm2, %v683_v55, %v684_v58  ;;  %v649_v18 = vsel %vm273_vm2, %v647_v61, %v648_v62  ;;  %v701_v20 = vrot.slane %v695_v52, 2 }
  0x4d   : > { %v702_v21 = vrot.slane %v696_v53, 2  ;;  %v699_v22 = vsel %vm268_vm1, %v697_v0, %v698_v6  ;;  %v1404_v23 = vadd.f32 %v685_v7, %v682_v1  ;;  %v713_v25 = vmul.f32 %v1132_v14, %v1116_v8 }
  0x4e   : > { %v1406_v24 = vadd.f32 %v649_v18, %v646_v17  ;;  %v714_v27 = vmul.f32 %v1134_v15, %v1118_v9  ;;  %v700_v29 = vadd.f32 %v699_v22, %v695_v52  ;;  %v505_v34 = vmul.f32 %v1124_v10, %v1124_v10 }
  0x4f   : > { %423 = vrot.lane.b32.xlu1 %v1251_v50, %s1068_s24  ;;  %401 = vrot.lane.b32.xlu0 %v1265_v57, %s1067_s23  ;;  %v703_v33 = vsel %vm273_vm2, %v701_v20, %v702_v21  ;;  %v506_v36 = vmul.f32 %v1126_v11, %v1126_v11  ;;  %v507_v37 = vmul.f32 %v1128_v12, %v1128_v12  ;;  %v715_v8 = vrot.slane %v713_v25, 1 }
  0x50   : > { %v508_v40 = vmul.f32 %v1130_v13, %v1130_v13  ;;  %v716_v9 = vrot.slane %v714_v27, 1  ;;  %v1426_v41 = vadd.f32 %v703_v33, %v700_v29  ;;  %v511_v11 = vmul.f32 %v1132_v14, %v1132_v14 }
  0x51   : > { %404 = vrot.lane.b32.xlu2 %v1265_v57, %s1068_s24  ;;  %v509_v10 = vadd.f32 %v507_v37, %v505_v34  ;;  %v512_v12 = vmul.f32 %v1134_v15, %v1134_v15  ;;  %v719_v45 = vrot.slane %v713_v25, 2  ;;  %v720_v47 = vrot.slane %v714_v27, 2 }
  0x52   : > { %v510_v42 = vadd.f32 %v508_v40, %v506_v36  ;;  %v717_v44 = vsel %vm268_vm1, %v715_v8, %v716_v9 }
  0x53   : > { %v513_v48 = vadd.f32 %v511_v11, %v509_v10  ;;  %v718_v14 = vadd.f32 %v717_v44, %v713_v25  ;;  %v721_v49 = vsel %vm273_vm2, %v719_v45, %v720_v47 }
  0x54   : > { %v514_v3 = vadd.f32 %v512_v12, %v510_v42 }
  0x55   : > { %v515_v51 = vrot.slane %v513_v48, 1  ;;  %v1445_v53 = vadd.f32 %v721_v49, %v718_v14  ;;  %v519_v59 = vrot.slane %v513_v48, 2 }
  0x56   : > { %v516_v4 = vrot.slane %v514_v3, 1  ;;  %v520_v60 = vrot.slane %v514_v3, 2 }
  0x57   : > { %474 = vrot.lane.b32.xlu1 %v1293_v26, %s1068_s24  ;;  %471 = vrot.lane.b32.xlu0 %v1293_v26, %s1067_s23 }
  0x58   : > { %v517_v58 = vsel %vm268_vm1, %v515_v51, %v516_v4  ;;  %v521_v61 = vsel %vm273_vm2, %v519_v59, %v520_v60 }
  0x59   : > { %485 = vrot.lane.b32.xlu2 %v1307_v35, %s1067_s23 }
  0x5f   : > { %499 = vrot.lane.b32.xlu1 %v1326_v56, %s1067_s23  ;;  %488 = vrot.lane.b32.xlu0 %v1307_v35, %s1068_s24 }
  0x61   : > { %544 = vrot.lane.b32.xlu2 %v1332_v2, %s1067_s23 }
  0x67   : > { %615 = vrot.lane.b32.xlu1 %v1352_v30, %s1067_s23  ;;  %562 = vrot.lane.b32.xlu0 %v1354_v31, %s1067_s23 }
  0x69   : > { %633 = vrot.lane.b32.xlu2 %v1356_v32, %s1067_s23 }
  0x6f   : > { %547 = vrot.lane.b32.xlu1 %v1332_v2, %s1068_s24  ;;  %502 = vrot.lane.b32.xlu0 %v1326_v56, %s1068_s24 }
  0x71   : > { %565 = vrot.lane.b32.xlu2 %v1354_v31, %s1068_s24 }
  0x77   : > { %618 = vrot.lane.b32.xlu1 %v1352_v30, %s1068_s24  ;;  %580 = vrot.lane.b32.xlu0 %v1386_v54, %s1067_s23 }
  0x79   : > { %636 = vrot.lane.b32.xlu2 %v1356_v32, %s1068_s24 }
  0x7f   : > { %687 = vrot.lane.b32.xlu1 %v1404_v23, %s1067_s23  ;;  %651 = vrot.lane.b32.xlu0 %v1406_v24, %s1067_s23 }
  0x81   : > { %705 = vrot.lane.b32.xlu2 %v1426_v41, %s1067_s23 }
  0x83   : > { %v307_v13 = vpop.permute.xlu2 %306 }
  0x84   : > { %v308_v15 = vadd.f32 %v307_v13, %v1181_v43  ;;  %v518_v43 = vadd.f32 %v517_v58, %v513_v48 }
  0x86   : > { %v1457_v0 = vadd.f32 %v521_v61, %v518_v43 }
  0x87   : > { %654 = vrot.lane.b32.xlu1 %v1406_v24, %s1068_s24  ;;  %583 = vrot.lane.b32.xlu0 %v1386_v54, %s1068_s24 }
  0x89   : > { %690 = vrot.lane.b32.xlu2 %v1404_v23, %s1068_s24 }
  0x8b   : > { %v310_v52 = vpop.permute.xlu2 %309 }
  0x8c   : > { %v311_v55 = vadd.f32 %v310_v52, %v308_v15 }
  0x8e   : > { %v1466_v29 = vmul.f32 0.11111111, %v311_v55 }
  0x8f   : > { %723 = vrot.lane.b32.xlu1 %v1445_v53, %s1067_s23  ;;  %708 = vrot.lane.b32.xlu0 %v1426_v41, %s1068_s24 }
  0x91   : > { %726 = vrot.lane.b32.xlu2 %v1445_v53, %s1068_s24 }
  0x93   : > { %v344_v62 = vpop.permute.xlu2 %343 }
  0x94   : > { %v345_v12 = vadd.f32 %v344_v62, %v1213_v19 }
  0x97   : > { %523 = vrot.lane.b32.xlu0 %v1457_v0, %s1067_s23  ;;  %526 = vrot.lane.b32.xlu1 %v1457_v0, %s1068_s24 }
  0x99   : > { %v292_v6 = vpop.permute.xlu1 %291  ;;  %v277_v1 = vpop.permute.xlu0 %276 }
  0x9a   : > { %v293_v7 = vadd.f32 %v292_v6, %v1168_v38  ;;  %v278_v18 = vadd.f32 %v277_v1, %v1170_v39 }
  0x9b   : > { %v366_v17 = vpop.permute.xlu2 %365 }
  0xa1   : > { %v295_v20 = vpop.permute.xlu1 %294  ;;  %v280_v21 = vpop.permute.xlu0 %279 }
  0xa2   : > { %v296_v22 = vadd.f32 %v295_v20, %v293_v7  ;;  %v281_v25 = vadd.f32 %v280_v21, %v278_v18 }
  0xa3   : > { %v421_v27 = vpop.permute.xlu2 %420 }
  0xa4   : > { %v1468_v33 = vmul.f32 0.11111111, %v296_v22  ;;  %v1470_v34 = vmul.f32 0.11111111, %v281_v25 }
  0xa6   : > { %v369_v36 = vmul.f32 %v1466_v29, %v1470_v34  ;;  %v350_v37 = vmul.f32 %v1468_v33, %v1470_v34  ;;  %v408_v38 = vmul.f32 %v1466_v29, %v1468_v33  ;;  %v330_v42 = vmul.f32 %v1470_v34, %v1470_v34 }
  0xa7   : > { %v388_v60 = vmul.f32 %v1468_v33, %v1468_v33 }
  0xa9   : > { %v327_v39 = vpop.permute.xlu1 %326  ;;  %v324_v40 = vpop.permute.xlu0 %323 }
  0xaa   : > { %v325_v8 = vadd.f32 %v324_v40, %v1205_v63 }
  0xab   : > { %v405_v9 = vpop.permute.xlu2 %404 }
  0xac   : > { %v328_v10 = vadd.f32 %v327_v39, %v325_v8 }
  0xae   : > { %v329_v11 = vmul.f32 0.11111111, %v328_v10 }
  0xb0   : > { %v331_v13 = vsub.f32 %v329_v11, %v330_v42 }
  0xb1   : > { %v363_v44 = vpop.permute.xlu1 %362  ;;  %v347_v45 = vpop.permute.xlu0 %346 }
  0xb2   : > { %v364_v47 = vadd.f32 %v363_v44, %v1227_v28  ;;  %v348_v48 = vadd.f32 %v347_v45, %v345_v12  ;;  %v422_v28 = vadd.f32 %v421_v27, %v1251_v50  ;;  %v332_v1 = vadd.f32 1.1111111e-08, %v331_v13 }
  0xb3   : > { %v486_v3 = vpop.permute.xlu2 %485 }
  0xb4   : > { %v367_v14 = vadd.f32 %v366_v17, %v364_v47  ;;  %v349_v15 = vmul.f32 0.11111111, %v348_v48 }
  0xb6   : > { %v368_v49 = vmul.f32 0.11111111, %v367_v14  ;;  %v351_v63 = vsub.f32 %v349_v15, %v350_v37 }
  0xb8   : > { %v370_v51 = vsub.f32 %v368_v49, %v369_v36  ;;  %v446_v20 = vmul.f32 %v351_v63, %v351_v63 }
  0xb9   : > { %v385_v4 = vpop.permute.xlu1 %384  ;;  %v382_v52 = vpop.permute.xlu0 %381 }
  0xba   : > { %v442_v55 = vmul.f32 %v370_v51, %v351_v63  ;;  %v383_v58 = vadd.f32 %v382_v52, %v1247_v46  ;;  %v427_v46 = vmul.f32 %v1466_v29, %v1466_v29  ;;  %v440_v10 = vmul.f32 %v370_v51, %v370_v51 }
  0xbb   : > { %v1484_v59 = vpop.permute.xlu2 %544 }
  0xbc   : > { %v386_v19 = vadd.f32 %v385_v4, %v383_v58 }
  0xbe   : > { %v387_v43 = vmul.f32 0.11111111, %v386_v19 }
  0xc0   : > { %v389_v61 = vsub.f32 %v387_v43, %v388_v60 }
  0xc1   : > { %v424_v62 = vpop.permute.xlu1 %423  ;;  %v402_v6 = vpop.permute.xlu0 %401 }
  0xc2   : > { %v390_v17 = vadd.f32 1.1111111e-08, %v389_v61  ;;  %v425_v7 = vadd.f32 %v424_v62, %v422_v28  ;;  %v403_v18 = vadd.f32 %v402_v6, %v1265_v57 }
  0xc3   : > { %v634_v21 = vpop.permute.xlu2 %633 }
  0xc4   : > { %v437_v22 = vmul.f32 %v390_v17, %v370_v51  ;;  %v445_v25 = vmul.f32 %v390_v17, %v332_v1  ;;  %v426_v36 = vmul.f32 0.11111111, %v425_v7  ;;  %v406_v37 = vadd.f32 %v405_v9, %v403_v18 }
  0xc5   : > { %v635_v6 = vadd.f32 %v634_v21, %v1356_v32 }
  0xc6   : > { %v447_v39 = vsub.f32 %v445_v25, %v446_v20  ;;  %v428_v40 = vsub.f32 %v426_v36, %v427_v46  ;;  %v407_v50 = vmul.f32 0.11111111, %v406_v37 }
  0xc8   : > { %v429_v27 = vadd.f32 1.1111111e-08, %v428_v40  ;;  %v409_v8 = vsub.f32 %v407_v50, %v408_v38  ;;  %v487_v38 = vadd.f32 %v486_v3, %v1307_v35 }
  0xc9   : > { %v475_v42 = vpop.permute.xlu1 %474  ;;  %v472_v11 = vpop.permute.xlu0 %471 }
  0xca   : > { %v430_v12 = vmul.f32 %v429_v27, %v390_v17  ;;  %v434_v13 = vmul.f32 %v429_v27, %v351_v63  ;;  %v439_v57 = vmul.f32 %v429_v27, %v332_v1  ;;  %v431_v44 = vmul.f32 %v409_v8, %v409_v8 }
  0xcb   : > { %v433_v45 = vmul.f32 %v409_v8, %v370_v51  ;;  %v436_v47 = vmul.f32 %v409_v8, %v351_v63  ;;  %v443_v48 = vmul.f32 %v409_v8, %v332_v1  ;;  %v566_v14 = vpop.permute.xlu2 %565  ;;  %v473_v17 = vadd.f32 %v472_v11, %v1293_v26 }
  0xcc   : > { %v441_v15 = vsub.f32 %v439_v57, %v440_v10  ;;  %v432_v49 = vsub.f32 %v430_v12, %v431_v44 }
  0xcd   : > { %v435_v4 = vsub.f32 %v433_v45, %v434_v13  ;;  %v438_v9 = vsub.f32 %v436_v47, %v437_v22  ;;  %v444_v52 = vsub.f32 %v442_v55, %v443_v48  ;;  %v1497_v20 = vadd.f32 %v475_v42, %v473_v17 }
  0xce   : > { %v448_v58 = vmul.f32 %v432_v49, %v332_v1  ;;  %v546_v42 = vadd.f32 %v1484_v59, %v1332_v2 }
  0xcf   : > { %v449_v19 = vmul.f32 %v435_v4, %v351_v63  ;;  %v451_v60 = vmul.f32 %v438_v9, %v370_v51  ;;  %v457_v3 = vadd.f32 %v435_v4, %v435_v4  ;;  %v459_v22 = vadd.f32 %v438_v9, %v438_v9 }
  0xd0   : > { %v461_v32 = vadd.f32 %v444_v52, %v444_v52  ;;  %v568_v26 = vmul.f32 %v1497_v20, %v1468_v33 }
  0xd1   : > { %v450_v43 = vadd.f32 %v449_v19, %v448_v58  ;;  %v500_v28 = vpop.permute.xlu1 %499  ;;  %v489_v61 = vpop.permute.xlu0 %488 }
  0xd2   : > { %v1495_v7 = vadd.f32 %v489_v61, %v487_v38  ;;  %v501_v38 = vadd.f32 %v500_v28, %v1326_v56 }
  0xd3   : > { %v452_v62 = vadd.f32 %v451_v60, %v450_v43  ;;  %v637_v18 = vpop.permute.xlu2 %636 }
  0xd4   : > { %v638_v55 = vadd.f32 %v637_v18, %v635_v6  ;;  %v639_v51 = vmul.f32 %v1495_v7, %v1468_v33  ;;  %v621_v19 = vmul.f32 %v1495_v7, %v1470_v34 }
  0xd5   : > { %1036 = vrcp.f32 %v452_v62 }
  0xd6   : > { %v640_v21 = vsub.f32 %v638_v55, %v639_v51 }
  0xd9   : > { %v616_v63 = vpop.permute.xlu1 %615  ;;  %v563_v35 = vpop.permute.xlu0 %562 }
  0xda   : > { %v564_v1 = vadd.f32 %v563_v35, %v1354_v31 }
  0xdb   : > { %v1037_v46 = vpop.eup %1036 }
  0xdc   : > { %v1504_v25 = vmul.f32 %v1037_v46, %v441_v15  ;;  %v567_v36 = vadd.f32 %v566_v14, %v564_v1  ;;  %v454_v37 = vmul.f32 %v1037_v46, %v432_v49  ;;  %v1506_v40 = vmul.f32 %v1037_v46, %v457_v3  ;;  %v706_v15 = vpop.permute.xlu2 %705 }
  0xdd   : > { %v1508_v50 = vmul.f32 %v1037_v46, %v447_v39  ;;  %v1510_v27 = vmul.f32 %v1037_v46, %v459_v22  ;;  %v1512_v8 = vmul.f32 %v1037_v46, %v461_v32  ;;  %v550_v39 = vmul.f32 %v1497_v20, %v1470_v34 }
  0xde   : > { %v661_v31 = vmul.f32 %v640_v21, %v1504_v25  ;;  %v569_v10 = vsub.f32 %v567_v36, %v568_v26  ;;  %v617_v49 = vadd.f32 %v616_v63, %v1352_v30  ;;  %v586_v32 = vmul.f32 %v1497_v20, %v1466_v29 }
  0xe0   : > { %v662_v11 = vmul.f32 %v661_v31, %v640_v21  ;;  %v590_v12 = vmul.f32 %v569_v10, %v1504_v25 }
  0xe1   : > { %v548_v13 = vpop.permute.xlu1 %547  ;;  %v503_v57 = vpop.permute.xlu0 %502 }
  0xe2   : > { %v591_v44 = vmul.f32 %v590_v12, %v569_v10  ;;  %v549_v45 = vadd.f32 %v548_v13, %v546_v42  ;;  %v1525_v62 = vadd.f32 %v503_v57, %v501_v38 }
  0xe4   : > { %v551_v47 = vsub.f32 %v549_v45, %v550_v39  ;;  %v691_v17 = vpop.permute.xlu2 %690  ;;  %v693_v3 = vmul.f32 %v1525_v62, %v1470_v34 }
  0xe6   : > { %v588_v48 = vmul.f32 %v551_v47, %v454_v37  ;;  %v596_v14 = vmul.f32 %v569_v10, %v551_v47 }
  0xe8   : > { %v589_v4 = vmul.f32 %v588_v48, %v551_v47  ;;  %v597_v9 = vmul.f32 %v596_v14, %v1506_v40 }
  0xe9   : > { %v619_v2 = vpop.permute.xlu1 %618  ;;  %v581_v59 = vpop.permute.xlu0 %580 }
  0xea   : > { %v592_v52 = vadd.f32 %v591_v44, %v589_v4  ;;  %v620_v58 = vadd.f32 %v619_v2, %v617_v49  ;;  %v582_v56 = vadd.f32 %v581_v59, %v1386_v54 }
  0xec   : > { %v622_v60 = vsub.f32 %v620_v58, %v621_v19  ;;  %v727_v49 = vpop.permute.xlu2 %726 }
  0xee   : > { %v659_v43 = vmul.f32 %v622_v60, %v454_v37  ;;  %v667_v61 = vmul.f32 %v640_v21, %v622_v60 }
  0xf0   : > { %v660_v6 = vmul.f32 %v659_v43, %v622_v60  ;;  %v668_v30 = vmul.f32 %v667_v61, %v1506_v40 }
  0xf1   : > { %v688_v18 = vpop.permute.xlu1 %687  ;;  %v652_v55 = vpop.permute.xlu0 %651 }
  0xf2   : > { %v663_v51 = vadd.f32 %v662_v11, %v660_v6  ;;  %v689_v63 = vadd.f32 %v688_v18, %v1404_v23  ;;  %v653_v28 = vadd.f32 %v652_v55, %v1406_v24  ;;  %v657_v23 = vmul.f32 %v1495_v7, %v1466_v29 }
  0xf4   : > { %v692_v35 = vadd.f32 %v691_v17, %v689_v63 }
  0xf6   : > { %v694_v1 = vsub.f32 %v692_v35, %v693_v3 }
  0xf8   : > { %v731_v46 = vmul.f32 %v694_v1, %v454_v37  ;;  %v707_v37 = vadd.f32 %v706_v15, %v1426_v41  ;;  %v729_v15 = vmul.f32 %v1525_v62, %v1466_v29 }
  0xf9   : > { %v655_v22 = vpop.permute.xlu1 %654  ;;  %v584_v26 = vpop.permute.xlu0 %583 }
  0xfa   : > { %v732_v36 = vmul.f32 %v731_v46, %v694_v1  ;;  %v656_v31 = vadd.f32 %v655_v22, %v653_v28  ;;  %v585_v42 = vadd.f32 %v584_v26, %v582_v56  ;;  %v530_v22 = vmul.f32 %v1495_v7, %v1495_v7 }
  0xfc   : > { %v658_v11 = vsub.f32 %v656_v31, %v657_v23  ;;  %v587_v12 = vsub.f32 %v585_v42, %v586_v32 }
  0xfe   : > { %v664_v34 = vmul.f32 %v658_v11, %v1508_v50  ;;  %v670_v13 = vmul.f32 %v658_v11, %v622_v60  ;;  %v673_v54 = vmul.f32 %v658_v11, %v640_v21  ;;  %v593_v24 = vmul.f32 %v587_v12, %v1508_v50 }
  0xff   : > { %v599_v57 = vmul.f32 %v587_v12, %v551_v47  ;;  %v602_v44 = vmul.f32 %v587_v12, %v569_v10  ;;  %v711_v21 = vmul.f32 %v1525_v62, %v1468_v33 }
 0x100   : > { %v665_v45 = vmul.f32 %v664_v34, %v658_v11  ;;  %v671_v39 = vmul.f32 %v670_v13, %v1510_v27  ;;  %v674_v48 = vmul.f32 %v673_v54, %v1512_v8  ;;  %v594_v14 = vmul.f32 %v593_v24, %v587_v12 }
 0x101   : > { %v600_v4 = vmul.f32 %v599_v57, %v1510_v27  ;;  %v603_v2 = vmul.f32 %v602_v44, %v1512_v8  ;;  %v724_v59 = vpop.permute.xlu1 %723  ;;  %v709_v58 = vpop.permute.xlu0 %708 }
 0x102   : > { %v666_v19 = vadd.f32 %v665_v45, %v663_v51  ;;  %v595_v41 = vadd.f32 %v594_v14, %v592_v52  ;;  %v725_v10 = vadd.f32 %v724_v59, %v1445_v53  ;;  %v710_v47 = vadd.f32 %v709_v58, %v707_v37 }
 0x104   : > { %v669_v60 = vadd.f32 %v668_v30, %v666_v19  ;;  %v598_v38 = vadd.f32 %v597_v9, %v595_v41  ;;  %v712_v43 = vsub.f32 %v710_v47, %v711_v21  ;;  %v728_v61 = vadd.f32 %v727_v49, %v725_v10 }
 0x106   : > { %v733_v6 = vmul.f32 %v712_v43, %v1504_v25  ;;  %v739_v17 = vmul.f32 %v712_v43, %v694_v1  ;;  %v730_v18 = vsub.f32 %v728_v61, %v729_v15  ;;  %v601_v55 = vadd.f32 %v600_v4, %v598_v38 }
 0x107   : > { %v672_v63 = vadd.f32 %v671_v39, %v669_v60 }
 0x108   : > { %v734_v33 = vmul.f32 %v733_v6, %v712_v43  ;;  %v740_v51 = vmul.f32 %v739_v17, %v1506_v40  ;;  %v736_v52 = vmul.f32 %v730_v18, %v1508_v50  ;;  %v742_v53 = vmul.f32 %v730_v18, %v694_v1 }
 0x109   : > { %v745_v35 = vmul.f32 %v730_v18, %v712_v43  ;;  %v604_v3 = vadd.f32 %v603_v2, %v601_v55  ;;  %v675_v56 = vadd.f32 %v674_v48, %v672_v63  ;;  %v524_v26 = vpop.permute.xlu0 %523  ;;  %v529_v40 = vmul.f32 %v1497_v20, %v1497_v20  ;;  %v527_v23 = vpop.permute.xlu1 %526 }
 0x10a   : > { %v735_v29 = vadd.f32 %v734_v33, %v732_v36  ;;  %v737_v30 = vmul.f32 %v736_v52, %v730_v18  ;;  %v743_v9 = vmul.f32 %v742_v53, %v1510_v27  ;;  %v532_v50 = vmul.f32 %v1525_v62, %v1525_v62 }
 0x10b   : > { %v676_v28 = vadd.f32 %v675_v56, %v604_v3  ;;  %v746_v25 = vmul.f32 %v745_v35, %v1512_v8  ;;  %v525_v36 = vadd.f32 %v524_v26, %v1457_v0  ;;  %v531_v31 = vadd.f32 %v530_v22, %v529_v40 }
 0x10c   : > { %v738_v46 = vadd.f32 %v737_v30, %v735_v29 }
 0x10d   : > { %v533_v42 = vadd.f32 %v532_v50, %v531_v31  ;;  %v528_v11 = vadd.f32 %v527_v23, %v525_v36 }
 0x10e   : > { %v741_v32 = vadd.f32 %v740_v51, %v738_v46 }
 0x110   : > { %v744_v1 = vadd.f32 %v743_v9, %v741_v32 }
 0x112   : > { %v747_v27 = vadd.f32 %v746_v25, %v744_v1 }
 0x114   : > { %v748_v8 = vadd.f32 %v747_v27, %v676_v28 }
 0x116   : > { %v749_v12 = vadd.f32 %v748_v8, %v533_v42 }
 0x118   : > { %v750_v34 = vmul.f32 0.11111111, %v749_v12  ;;  %760 = sbr.rel (%p999_p3) target bundleno = 289 (0x121), region = 134 }
 0x11a   : > { %v751_v7 = vsub.f32 %v528_v11, %v750_v34 }
 0x11c   : > { %v753_v13 = vmul.f32 %v1110_v5, %v751_v7 }
 0x11d   : > { %v761_v20 = vld [vmem:[#allocation5] sm:$0xff] }
 0x11e   : > { %v762_v62 = vadd.f32 %v761_v20, %v753_v13 }
 0x120   : > { %763 = vst [vmem:[#allocation5] sm:$0xff] %v762_v62 }
 0x121 PF: > { %p1000_p4 = scmp.le.s32.totalorder %s756_s25, 14 }
 0x123   : > { %767 = sbr.rel (%p1000_p4) target bundleno = 304 (0x130), region = 138 }
 0x128   : > { %v768_v0 = vstv %s1095_s12  ;;  %v770_v24 = vld [vmem:[#allocation5] sm:$0xff] }
 0x129   : > { %v769_v54 = vadd.s32 %v768_v0, %v1136_v16 }
 0x12b   : > { %vm771_vm3 = vcmp.lt.s32.totalorder %v769_v54, 14 }
 0x12c   : > { %v772_v37 = vsel %vm771_vm3, %v753_v13, 0.0 }
 0x12d   : > { %v773_v5 = vadd.f32 %v772_v37, %v770_v24 }
 0x12f   : > { %774 = vst [vmem:[#allocation5] sm:$0xff] %v773_v5 }
 0x130 PF:  {}
 0x136   : > { %v778_v57 = vld [vmem:[#allocation5] sm:$0xff] }
 0x137   : > { %779 = vadd.xlane.f32.xlu0 %v778_v57 }
 0x1aa   : > { %v780_v44 = vpop.xlane.xlu0 %779 }
 0x1ab   : > { %v781_v45 = vrot.slane %v780_v44, 4 }
 0x1ad   : > { %v782_v39 = vadd.f32 %v781_v45, %v780_v44 }
 0x1af   : > { %v783_v48 = vrot.slane %v782_v39, 2 }
 0x1b1   : > { %v784_v14 = vadd.f32 %v783_v48, %v782_v39 }
 0x1b3   : > { %v785_v49 = vrot.slane %v784_v14, 1 }
 0x1b5   : > { %v786_v4 = vadd.f32 %v785_v49, %v784_v14 }
 0x1b7   : > { %1015 = vpush %v786_v4 }
 0x1e8   : > { %s1016_s26 = spop %1015 }
 0x1e9   : > { %v788_v2 = vstv %s1016_s26 }
 0x1ea   : > { %789 = vst [vmem:[%s1108_s19] sm:$0xff] %v788_v2 }
 0x1eb PF: > { %s12_s10 = sadd.s32 1, %s1064_s10   ;;  %s1578_s9 = smov %s1580_s11 }
 0x1ec   : > { %p9_p5 = scmp.ge.s32.totalorder %s12_s10, 3  }
 0x1ee   :  { %11 = sbr.rel (!%p9_p5) target bundleno = 1 (0x1), region = 231 }
 0x1f3   :  { %809 = vsyncmov [#allocation4] }
 0x1f6   :  { %s810_s27 = vpop.sfrf %809 }
 0x1f7   :  { %p1003_p6 = scmp.ne.s32.totalorder %s810_s27, 0 }
 0x1f9   :  { %814 = shalt.err (%p1003_p6)  }
 0x1fa   :  { %816 = vsyncmov [#allocation4 + $0x1] }
 0x1fd   :  { %s817_s28 = vpop.sfrf %816 }
 0x1fe   :  { %p1004_p7 = scmp.ne.s32.totalorder %s817_s28, 0 }
 0x200   :  { %821 = shalt.err (%p1004_p7)  }
 0x201   :  { %823 = vsyncmov [#allocation4 + $0x2] }
 0x204   :  { %s824_s29 = vpop.sfrf %823 }
 0x205   :  { %p1005_p8 = scmp.ne.s32.totalorder %s824_s29, 0 }
 0x207   :  { %828 = shalt.err (%p1005_p8)  }
 0x208   :  { %830 = vsyncmov [#allocation4 + $0x3] }
 0x20b   :  { %s831_s30 = vpop.sfrf %830 }
 0x20c   :  { %p1006_p9 = scmp.ne.s32.totalorder %s831_s30, 0 }
 0x20e   :  { %835 = shalt.err (%p1006_p9)  }
 0x20f   :  { %837 = vsyncmov [#allocation4 + $0x4] }
 0x212   :  { %s838_s3 = vpop.sfrf %837 }
 0x213   :  { %p1007_p10 = scmp.ne.s32.totalorder %s838_s3, 0 }
 0x215   :  { %842 = shalt.err (%p1007_p10)  }
 0x216   :  { %844 = vsyncmov [#allocation4 + $0x5] }
 0x219   :  { %s845_s0 = vpop.sfrf %844 }
 0x21a   :  { %p1008_p11 = scmp.ne.s32.totalorder %s845_s0, 0 }
 0x21c   :  { %849 = shalt.err (%p1008_p11)  }
 0x21d   :  { %851 = vsyncmov [#allocation4 + $0x6] }
 0x220   :  { %s852_s1 = vpop.sfrf %851 }
 0x221   :  { %p1009_p12 = scmp.ne.s32.totalorder %s852_s1, 0 }
 0x223   :  { %856 = shalt.err (%p1009_p12)  }
 0x224   :  { %858 = vsyncmov [#allocation4 + $0x7] }
 0x227   :  { %s859_s2 = vpop.sfrf %858 }
 0x228   :  { %p1010_p13 = scmp.ne.s32.totalorder %s859_s2, 0 }
 0x22a   :  { %863 = shalt.err (%p1010_p13)  }
 0x22b   :  { %865 = vsyncmov [#allocation4 + $0x8] }
 0x22e   :  { %s866_s4 = vpop.sfrf %865 }
 0x22f   :  { %p1011_p0 = scmp.ne.s32.totalorder %s866_s4, 0 }
 0x231   :  { %870 = shalt.err (%p1011_p0)  }
 0x232   :  { %872 = vsyncmov [#allocation4 + $0x9] }
 0x235   :  { %s873_s5 = vpop.sfrf %872 }
 0x236   :  { %p1012_p1 = scmp.ne.s32.totalorder %s873_s5, 0 }
 0x238   :  { %877 = shalt.err (%p1012_p1)  }
 0x239   :  { %879 = vsyncmov [#allocation4 + $0xa] }
 0x23c   :  { %s880_s6 = vpop.sfrf %879 }
 0x23d   :  { %p1013_p2 = scmp.ne.s32.totalorder %s880_s6, 0 }
 0x23f   :  { %884 = shalt.err (%p1013_p2)  }
 0x240   :  { %886 = vsyncmov [#allocation4 + $0xb] }
 0x243   :  { %s887_s7 = vpop.sfrf %886 }
 0x244   :  { %p1014_p3 = scmp.ne.s32.totalorder %s887_s7, 0 }
 0x246   :  { %891 = shalt.err (%p1014_p3)  }

</bundles_post_ra>
